<compile_context>
chip_gen: v5e
topology: v5e:2x2
jax: 0.10.0
libtpu: 0.0.40
codegen_flags: <defaults>
</compile_context>

<pallas_src>
import jax
import jax.numpy as jnp
import numpy as np
from jax.experimental import pallas as pl
from jax.experimental.pallas import tpu as pltpu

# ---------------- small synthetic CLIP-vision config ----------------
B = 2              # batch
C = 3              # input channels (RGB)
IMG = 16           # image size
PATCH = 8          # patch size
NP = (IMG // PATCH) ** 2          # num patches = 4
S = NP + 1                        # tokens incl. cls = 5
T = B * S                         # total tokens (flattened over batch) = 10
D = 32             # hidden size
NH = 4             # attention heads
HD = D // NH       # head dim = 8
I = 64             # MLP intermediate size
L = 2              # encoder layers
EPS = 1e-5
SCALE = HD ** -0.5


def _ln(x, g, b):
    mu = jnp.mean(x, axis=-1, keepdims=True)
    var = jnp.mean((x - mu) ** 2, axis=-1, keepdims=True)
    return (x - mu) * jax.lax.rsqrt(var + EPS) * g + b


# ---------------- fused Pallas kernel: grid = (L,) ----------------
def fused_encoder_kernel(patch_ref, wp_ref, cls_ref, pos_ref,
                         preg_ref, preb_ref, bias_ref,
                         ln1g_ref, ln1b_ref,
                         qw_ref, qb_ref, kw_ref, kb_ref, vw_ref, vb_ref,
                         ow_ref, ob_ref,
                         ln2g_ref, ln2b_ref,
                         f1w_ref, f1b_ref, f2w_ref, f2b_ref,
                         o_ref):
    l = pl.program_id(0)

    # --- prologue (layer 0 only): patch embed conv-as-matmul, cls token,
    #     position embeddings, pre_layrnorm.  Residual lives in o_ref (VMEM).
    @pl.when(l == 0)
    def _():
        pe = jnp.dot(patch_ref[...], wp_ref[...],
                     preferred_element_type=jnp.float32)        # (B*NP, D)
        cls_row = cls_ref[...] + pos_ref[0:1, :]                 # (1, D)
        pos_patch = pos_ref[1:S, :]                              # (NP, D)
        rows = []
        for b in range(B):                                       # static, B=2
            rows.append(cls_row)
            rows.append(pe[b * NP:(b + 1) * NP, :] + pos_patch)
        emb = jnp.concatenate(rows, axis=0)                      # (T, D)
        o_ref[...] = _ln(emb, preg_ref[...], preb_ref[...])      # single full store

    h = o_ref[...]                                               # (T, D) residual

    # --- self-attention block (scale already folded into q_w/q_b) ---
    hn = _ln(h, ln1g_ref[...], ln1b_ref[...])
    q = jnp.dot(hn, qw_ref[...], preferred_element_type=jnp.float32) + qb_ref[...]
    k = jnp.dot(hn, kw_ref[...], preferred_element_type=jnp.float32) + kb_ref[...]
    v = jnp.dot(hn, vw_ref[...], preferred_element_type=jnp.float32) + vb_ref[...]

    attn_bias = bias_ref[...]                                    # (T, T) block-diag mask
    head_outs = []
    for hh in range(NH):                                         # static loop over heads
        sl = slice(hh * HD, (hh + 1) * HD)
        qh, kh, vh = q[:, sl], k[:, sl], v[:, sl]
        # q @ k^T without explicit transpose (contract last dims)
        scores = jax.lax.dot_general(qh, kh, (((1,), (1,)), ((), ())),
                                     preferred_element_type=jnp.float32)
        scores = scores + attn_bias                              # mask cross-batch
        scores = scores - jnp.max(scores, axis=-1, keepdims=True)
        p = jnp.exp(scores)
        p = p * pl.reciprocal(jnp.sum(p, axis=-1, keepdims=True), approx=True)
        head_outs.append(jnp.dot(p, vh, preferred_element_type=jnp.float32))
    ctx = jnp.concatenate(head_outs, axis=-1)                    # (T, D)
    attn = jnp.dot(ctx, ow_ref[...],
                   preferred_element_type=jnp.float32) + ob_ref[...]
    h = h + attn

    # --- MLP block (quick_gelu, CLIP default) ---
    hn2 = _ln(h, ln2g_ref[...], ln2b_ref[...])
    m = jnp.dot(hn2, f1w_ref[...], preferred_element_type=jnp.float32) + f1b_ref[...]
    m = m * jax.nn.sigmoid(1.702 * m)                            # quick_gelu
    m = jnp.dot(m, f2w_ref[...], preferred_element_type=jnp.float32) + f2b_ref[...]
    o_ref[...] = h + m


# ---------------- wrapper ----------------
def clip_vision_forward(pixel_values, params):
    # glue: non-overlapping patch extraction (NCHW, stride == kernel) -> (B*NP, C*P*P)
    x = pixel_values.reshape(B, C, IMG // PATCH, PATCH, IMG // PATCH, PATCH)
    x = x.transpose(0, 2, 4, 1, 3, 5).reshape(B * NP, C * PATCH * PATCH)

    # constant block-diagonal attention bias: tokens only attend within their batch.
    np_bias = np.where(
        (np.arange(T)[:, None] // S) == (np.arange(T)[None, :] // S), 0.0, -1e30
    ).astype(np.float32)
    attn_bias = jnp.asarray(np_bias)

    # BlockSpecs: prologue inputs are full-array blocks resident across layers;
    # per-layer params index by l with the leading layer axis squeezed.
    w_dd = pl.BlockSpec((pl.Squeezed(), D, D), lambda l: (l, 0, 0))
    w_di = pl.BlockSpec((pl.Squeezed(), D, I), lambda l: (l, 0, 0))
    w_id = pl.BlockSpec((pl.Squeezed(), I, D), lambda l: (l, 0, 0))
    b_d = pl.BlockSpec((pl.Squeezed(), 1, D), lambda l: (l, 0, 0))
    b_i = pl.BlockSpec((pl.Squeezed(), 1, I), lambda l: (l, 0, 0))

    out = pl.pallas_call(
        fused_encoder_kernel,
        out_shape=jax.ShapeDtypeStruct((T, D), jnp.float32),
        grid=(L,),
        in_specs=[
            pl.BlockSpec((B * NP, C * PATCH * PATCH), lambda l: (0, 0)),  # patches
            pl.BlockSpec((C * PATCH * PATCH, D), lambda l: (0, 0)),       # patch weight
            pl.BlockSpec((1, D), lambda l: (0, 0)),                       # cls
            pl.BlockSpec((S, D), lambda l: (0, 0)),                       # pos emb
            pl.BlockSpec((1, D), lambda l: (0, 0)),                       # pre-LN gamma
            pl.BlockSpec((1, D), lambda l: (0, 0)),                       # pre-LN beta
            pl.BlockSpec((T, T), lambda l: (0, 0)),                       # attn bias
            b_d, b_d,                              # ln1 gamma / beta
            w_dd, b_d, w_dd, b_d, w_dd, b_d,       # q, k, v
            w_dd, b_d,                             # out proj
            b_d, b_d,                              # ln2 gamma / beta
            w_di, b_i, w_id, b_d,                  # fc1, fc2
        ],
        out_specs=pl.BlockSpec((T, D), lambda l: (0, 0)),
        compiler_params=pltpu.CompilerParams(
            dimension_semantics=("arbitrary",)),
    )(x, params["patch_w"], params["cls"], params["pos"],
      params["pre_ln_g"], params["pre_ln_b"], attn_bias,
      params["ln1_g"], params["ln1_b"],
      params["q_w"], params["q_b"], params["k_w"], params["k_b"],
      params["v_w"], params["v_b"], params["o_w"], params["o_b"],
      params["ln2_g"], params["ln2_b"],
      params["fc1_w"], params["fc1_b"], params["fc2_w"], params["fc2_b"])

    return out.reshape(B, S, D)


# ---------------- pure-JAX reference (for correctness check) ----------------
def reference_forward(pixel_values, params):
    x = pixel_values.reshape(B, C, IMG // PATCH, PATCH, IMG // PATCH, PATCH)
    x = x.transpose(0, 2, 4, 1, 3, 5).reshape(B, NP, C * PATCH * PATCH)
    pe = x @ params["patch_w"]                                    # (B, NP, D)
    cls = jnp.broadcast_to(params["cls"], (B, 1, D))
    h = jnp.concatenate([cls, pe], axis=1) + params["pos"][None]  # (B, S, D)
    h = _ln(h, params["pre_ln_g"][0], params["pre_ln_b"][0])
    for l in range(L):
        hn = _ln(h, params["ln1_g"][l, 0], params["ln1_b"][l, 0])
        # q_w already contains the head_dim**-0.5 scale (folded at init)
        q = hn @ params["q_w"][l] + params["q_b"][l]
        k = hn @ params["k_w"][l] + params["k_b"][l]
        v = hn @ params["v_w"][l] + params["v_b"][l]
        q = q.reshape(B, S, NH, HD).transpose(0, 2, 1, 3)
        k = k.reshape(B, S, NH, HD).transpose(0, 2, 1, 3)
        v = v.reshape(B, S, NH, HD).transpose(0, 2, 1, 3)
        s = jnp.einsum('bhqd,bhkd->bhqk', q, k)
        p = jax.nn.softmax(s, axis=-1)
        ctx = jnp.einsum('bhqk,bhkd->bhqd', p, v).transpose(0, 2, 1, 3).reshape(B, S, D)
        h = h + ctx @ params["o_w"][l] + params["o_b"][l]
        hn2 = _ln(h, params["ln2_g"][l, 0], params["ln2_b"][l, 0])
        m = hn2 @ params["fc1_w"][l] + params["fc1_b"][l]
        m = m * jax.nn.sigmoid(1.702 * m)
        h = h + m @ params["fc2_w"][l] + params["fc2_b"][l]
    return h


# ---------------- deterministic parameter init ----------------
def init_params(key):
    ks = jax.random.split(key, 12)

    def nrm(k, shape):
        return (0.02 * jax.random.normal(k, shape)).astype(jnp.float32)

    # Conv2d(k=P, stride=P, bias=False) weight, pre-folded at init time to the
    # (C*P*P, D) matmul layout used by the kernel.
    conv_w = nrm(ks[0], (D, C, PATCH, PATCH))
    patch_w = conv_w.reshape(D, C * PATCH * PATCH).T

    # attention scale (HD**-0.5) folded into q projection at init time
    # (q_b is zero here; in general it would be scaled too).
    q_w = nrm(ks[3], (L, D, D)) * SCALE
    q_b = jnp.zeros((L, 1, D), jnp.float32)

    params = {
        "patch_w": patch_w,
        "cls": nrm(ks[1], (1, D)),
        "pos": nrm(ks[2], (S, D)),                     # position embedding table
        "pre_ln_g": jnp.ones((1, D), jnp.float32),
        "pre_ln_b": jnp.zeros((1, D), jnp.float32),
        "ln1_g": jnp.ones((L, 1, D), jnp.float32),
        "ln1_b": jnp.zeros((L, 1, D), jnp.float32),
        "ln2_g": jnp.ones((L, 1, D), jnp.float32),
        "ln2_b": jnp.zeros((L, 1, D), jnp.float32),
        "q_w": q_w, "q_b": q_b,
        "k_w": nrm(ks[4], (L, D, D)), "k_b": jnp.zeros((L, 1, D), jnp.float32),
        "v_w": nrm(ks[5], (L, D, D)), "v_b": jnp.zeros((L, 1, D), jnp.float32),
        "o_w": nrm(ks[6], (L, D, D)), "o_b": jnp.zeros((L, 1, D), jnp.float32),
        "fc1_w": nrm(ks[7], (L, D, I)), "fc1_b": jnp.zeros((L, 1, I), jnp.float32),
        "fc2_w": nrm(ks[8], (L, I, D)), "fc2_b": jnp.zeros((L, 1, D), jnp.float32),
    }
    return params


if __name__ == "__main__":
    key = jax.random.PRNGKey(0)
    pkey, xkey = jax.random.split(key)
    params = init_params(pkey)
    pixel_values = jax.random.normal(xkey, (B, C, IMG, IMG), dtype=jnp.float32)

    out = clip_vision_forward(pixel_values, params)
    out = jax.block_until_ready(out)
    assert out.shape == (B, S, D), out.shape
    assert jnp.all(jnp.isfinite(out))

    ref = jax.block_until_ready(reference_forward(pixel_values, params))
    max_err = float(jnp.max(jnp.abs(out - ref)))
    assert max_err < 5e-2, f"max abs err vs reference: {max_err}"

    print("KERNEL_OK")
</pallas_src>

<mosaic_0001>
module attributes {stable_mosaic.version = 11 : i64} {
  func.func @fused_encoder_kernel(%arg0: i32, %arg1: memref<8x192xf32, #tpu.memory_space<vmem>>, %arg2: memref<192x32xf32, #tpu.memory_space<vmem>>, %arg3: memref<1x32xf32, #tpu.memory_space<vmem>>, %arg4: memref<5x32xf32, #tpu.memory_space<vmem>>, %arg5: memref<1x32xf32, #tpu.memory_space<vmem>>, %arg6: memref<1x32xf32, #tpu.memory_space<vmem>>, %arg7: memref<10x10xf32, #tpu.memory_space<vmem>>, %arg8: memref<1x1x32xf32, #tpu.memory_space<vmem>>, %arg9: memref<1x1x32xf32, #tpu.memory_space<vmem>>, %arg10: memref<1x32x32xf32, #tpu.memory_space<vmem>>, %arg11: memref<1x1x32xf32, #tpu.memory_space<vmem>>, %arg12: memref<1x32x32xf32, #tpu.memory_space<vmem>>, %arg13: memref<1x1x32xf32, #tpu.memory_space<vmem>>, %arg14: memref<1x32x32xf32, #tpu.memory_space<vmem>>, %arg15: memref<1x1x32xf32, #tpu.memory_space<vmem>>, %arg16: memref<1x32x32xf32, #tpu.memory_space<vmem>>, %arg17: memref<1x1x32xf32, #tpu.memory_space<vmem>>, %arg18: memref<1x1x32xf32, #tpu.memory_space<vmem>>, %arg19: memref<1x1x32xf32, #tpu.memory_space<vmem>>, %arg20: memref<1x32x64xf32, #tpu.memory_space<vmem>>, %arg21: memref<1x1x64xf32, #tpu.memory_space<vmem>>, %arg22: memref<1x64x32xf32, #tpu.memory_space<vmem>>, %arg23: memref<1x1x32xf32, #tpu.memory_space<vmem>>, %arg24: memref<10x32xf32, #tpu.memory_space<vmem>>) attributes {dimension_semantics = [#tpu.dimension_semantics<arbitrary>], iteration_bounds = array<i64: 2>, scalar_prefetch = 0 : i64, scratch_operands = 0 : i64, tpu.core_type = #tpu.core_type<tc>, window_params = [{pipeline_mode = #tpu.pipeline_mode<synchronous>, transform_indices = @transform_0, window_bounds = array<i64: 8, 192>}, {pipeline_mode = #tpu.pipeline_mode<synchronous>, transform_indices = @transform_1, window_bounds = array<i64: 192, 32>}, {pipeline_mode = #tpu.pipeline_mode<synchronous>, transform_indices = @transform_2, window_bounds = array<i64: 1, 32>}, {pipeline_mode = #tpu.pipeline_mode<synchronous>, transform_indices = @transform_3, window_bounds = array<i64: 5, 32>}, {pipeline_mode = #tpu.pipeline_mode<synchronous>, transform_indices = @transform_4, window_bounds = array<i64: 1, 32>}, {pipeline_mode = #tpu.pipeline_mode<synchronous>, transform_indices = @transform_5, window_bounds = array<i64: 1, 32>}, {pipeline_mode = #tpu.pipeline_mode<synchronous>, transform_indices = @transform_6, window_bounds = array<i64: 10, 10>}, {transform_indices = @transform_7, window_bounds = array<i64: 1, 1, 32>}, {transform_indices = @transform_8, window_bounds = array<i64: 1, 1, 32>}, {transform_indices = @transform_9, window_bounds = array<i64: 1, 32, 32>}, {transform_indices = @transform_10, window_bounds = array<i64: 1, 1, 32>}, {transform_indices = @transform_11, window_bounds = array<i64: 1, 32, 32>}, {transform_indices = @transform_12, window_bounds = array<i64: 1, 1, 32>}, {transform_indices = @transform_13, window_bounds = array<i64: 1, 32, 32>}, {transform_indices = @transform_14, window_bounds = array<i64: 1, 1, 32>}, {transform_indices = @transform_15, window_bounds = array<i64: 1, 32, 32>}, {transform_indices = @transform_16, window_bounds = array<i64: 1, 1, 32>}, {transform_indices = @transform_17, window_bounds = array<i64: 1, 1, 32>}, {transform_indices = @transform_18, window_bounds = array<i64: 1, 1, 32>}, {transform_indices = @transform_19, window_bounds = array<i64: 1, 32, 64>}, {transform_indices = @transform_20, window_bounds = array<i64: 1, 1, 64>}, {transform_indices = @transform_21, window_bounds = array<i64: 1, 64, 32>}, {transform_indices = @transform_22, window_bounds = array<i64: 1, 1, 32>}, {pipeline_mode = #tpu.pipeline_mode<synchronous>, transform_indices = @transform_23, window_bounds = array<i64: 10, 32>}]} {
    %c0_i32 = arith.constant 0 : i32
    %0 = arith.cmpi eq, %arg0, %c0_i32 : i32
    %1 = arith.extui %0 : i1 to i32
    %c0_i32_0 = arith.constant 0 : i32
    %2 = arith.cmpi ne, %1, %c0_i32_0 : i32
    scf.if %2 {
      %c0_87 = arith.constant 0 : index
      %c0_88 = arith.constant 0 : index
      %175 = vector.load %arg1[%c0_87, %c0_88] : memref<8x192xf32, #tpu.memory_space<vmem>>, vector<8x192xf32>
      %c0_89 = arith.constant 0 : index
      %c0_90 = arith.constant 0 : index
      %176 = vector.load %arg2[%c0_89, %c0_90] : memref<192x32xf32, #tpu.memory_space<vmem>>, vector<192x32xf32>
      %cst_91 = arith.constant dense<0.000000e+00> : vector<8x32xf32>
      %177 = tpu.matmul %175, %176, %cst_91 {dimension_numbers = #tpu.dot_dimension_numbers<[1], [0], [0], [1], [0, 0, 1, 1], [], []>} : vector<8x192xf32>, vector<192x32xf32>, vector<8x32xf32> -> vector<8x32xf32>
      %c0_92 = arith.constant 0 : index
      %c0_93 = arith.constant 0 : index
      %178 = vector.load %arg3[%c0_92, %c0_93] : memref<1x32xf32, #tpu.memory_space<vmem>>, vector<1x32xf32>
      %c0_94 = arith.constant 0 : index
      %c0_95 = arith.constant 0 : index
      %179 = vector.load %arg4[%c0_94, %c0_95] : memref<5x32xf32, #tpu.memory_space<vmem>>, vector<1x32xf32>
      %180 = arith.addf %178, %179 : vector<1x32xf32>
      %c1 = arith.constant 1 : index
      %c0_96 = arith.constant 0 : index
      %181 = vector.load %arg4[%c1, %c0_96] : memref<5x32xf32, #tpu.memory_space<vmem>>, vector<4x32xf32>
      %182 = vector.extract_strided_slice %177 {offsets = [0, 0], sizes = [4, 32], strides = [1, 1]} : vector<8x32xf32> to vector<4x32xf32>
      %183 = arith.addf %182, %181 : vector<4x32xf32>
      %184 = vector.extract_strided_slice %177 {offsets = [4, 0], sizes = [4, 32], strides = [1, 1]} : vector<8x32xf32> to vector<4x32xf32>
      %185 = arith.addf %184, %181 : vector<4x32xf32>
      %186 = tpu.concatenate %180, %183, %180, %185 in 0 : vector<1x32xf32>, vector<4x32xf32>, vector<1x32xf32>, vector<4x32xf32> -> vector<10x32xf32>
      %c0_97 = arith.constant 0 : index
      %c0_98 = arith.constant 0 : index
      %187 = vector.load %arg5[%c0_97, %c0_98] : memref<1x32xf32, #tpu.memory_space<vmem>>, vector<1x32xf32>
      %c0_99 = arith.constant 0 : index
      %c0_100 = arith.constant 0 : index
      %188 = vector.load %arg6[%c0_99, %c0_100] : memref<1x32xf32, #tpu.memory_space<vmem>>, vector<1x32xf32>
      %cst_101 = arith.constant dense<0.000000e+00> : vector<10xf32>
      %189 = vector.multi_reduction <add>, %186, %cst_101 [1] : vector<10x32xf32> to vector<10xf32>
      %190 = vector.shape_cast %189 : vector<10xf32> to vector<10x1xf32>
      %cst_102 = arith.constant 3.200000e+01 : f32
      %191 = vector.broadcast %cst_102 : f32 to vector<10x1xf32>
      %192 = arith.divf %190, %191 : vector<10x1xf32>
      %193 = vector.broadcast %192 : vector<10x1xf32> to vector<10x32xf32>
      %194 = arith.subf %186, %193 : vector<10x32xf32>
      %195 = arith.mulf %194, %194 : vector<10x32xf32>
      %cst_103 = arith.constant dense<0.000000e+00> : vector<10xf32>
      %196 = vector.multi_reduction <add>, %195, %cst_103 [1] : vector<10x32xf32> to vector<10xf32>
      %197 = vector.shape_cast %196 : vector<10xf32> to vector<10x1xf32>
      %cst_104 = arith.constant 3.200000e+01 : f32
      %198 = vector.broadcast %cst_104 : f32 to vector<10x1xf32>
      %199 = arith.divf %197, %198 : vector<10x1xf32>
      %200 = vector.broadcast %192 : vector<10x1xf32> to vector<10x32xf32>
      %201 = arith.subf %186, %200 : vector<10x32xf32>
      %cst_105 = arith.constant 9.99999974E-6 : f32
      %202 = vector.broadcast %cst_105 : f32 to vector<10x1xf32>
      %203 = arith.addf %199, %202 : vector<10x1xf32>
      %204 = math.rsqrt %203 : vector<10x1xf32>
      %205 = vector.broadcast %204 : vector<10x1xf32> to vector<10x32xf32>
      %206 = arith.mulf %201, %205 : vector<10x32xf32>
      %207 = vector.broadcast %187 : vector<1x32xf32> to vector<10x32xf32>
      %208 = arith.mulf %206, %207 : vector<10x32xf32>
      %209 = vector.broadcast %188 : vector<1x32xf32> to vector<10x32xf32>
      %210 = arith.addf %208, %209 : vector<10x32xf32>
      %c0_106 = arith.constant 0 : index
      %c0_107 = arith.constant 0 : index
      %211 = vector.load %arg24[%c0_106, %c0_107] : memref<10x32xf32, #tpu.memory_space<vmem>>, vector<10x32xf32>
      tpu.vector_store %arg24[%c0_106, %c0_107], %210 {strides = array<i32>} : memref<10x32xf32, #tpu.memory_space<vmem>>, vector<10x32xf32>,
    } else {
    }
    %c0 = arith.constant 0 : index
    %c0_1 = arith.constant 0 : index
    %3 = vector.load %arg24[%c0, %c0_1] : memref<10x32xf32, #tpu.memory_space<vmem>>, vector<10x32xf32>
    %c0_2 = arith.constant 0 : index
    %c0_3 = arith.constant 0 : index
    %c0_4 = arith.constant 0 : index
    %4 = vector.load %arg8[%c0_2, %c0_3, %c0_4] : memref<1x1x32xf32, #tpu.memory_space<vmem>>, vector<1x1x32xf32>
    %5 = vector.shape_cast %4 : vector<1x1x32xf32> to vector<1x32xf32>
    %c0_5 = arith.constant 0 : index
    %c0_6 = arith.constant 0 : index
    %c0_7 = arith.constant 0 : index
    %6 = vector.load %arg9[%c0_5, %c0_6, %c0_7] : memref<1x1x32xf32, #tpu.memory_space<vmem>>, vector<1x1x32xf32>
    %7 = vector.shape_cast %6 : vector<1x1x32xf32> to vector<1x32xf32>
    %cst = arith.constant dense<0.000000e+00> : vector<10xf32>
    %8 = vector.multi_reduction <add>, %3, %cst [1] : vector<10x32xf32> to vector<10xf32>
    %9 = vector.shape_cast %8 : vector<10xf32> to vector<10x1xf32>
    %cst_8 = arith.constant 3.200000e+01 : f32
    %10 = vector.broadcast %cst_8 : f32 to vector<10x1xf32>
    %11 = arith.divf %9, %10 : vector<10x1xf32>
    %12 = vector.broadcast %11 : vector<10x1xf32> to vector<10x32xf32>
    %13 = arith.subf %3, %12 : vector<10x32xf32>
    %14 = arith.mulf %13, %13 : vector<10x32xf32>
    %cst_9 = arith.constant dense<0.000000e+00> : vector<10xf32>
    %15 = vector.multi_reduction <add>, %14, %cst_9 [1] : vector<10x32xf32> to vector<10xf32>
    %16 = vector.shape_cast %15 : vector<10xf32> to vector<10x1xf32>
    %cst_10 = arith.constant 3.200000e+01 : f32
    %17 = vector.broadcast %cst_10 : f32 to vector<10x1xf32>
    %18 = arith.divf %16, %17 : vector<10x1xf32>
    %19 = vector.broadcast %11 : vector<10x1xf32> to vector<10x32xf32>
    %20 = arith.subf %3, %19 : vector<10x32xf32>
    %cst_11 = arith.constant 9.99999974E-6 : f32
    %21 = vector.broadcast %cst_11 : f32 to vector<10x1xf32>
    %22 = arith.addf %18, %21 : vector<10x1xf32>
    %23 = math.rsqrt %22 : vector<10x1xf32>
    %24 = vector.broadcast %23 : vector<10x1xf32> to vector<10x32xf32>
    %25 = arith.mulf %20, %24 : vector<10x32xf32>
    %26 = vector.broadcast %5 : vector<1x32xf32> to vector<10x32xf32>
    %27 = arith.mulf %25, %26 : vector<10x32xf32>
    %28 = vector.broadcast %7 : vector<1x32xf32> to vector<10x32xf32>
    %29 = arith.addf %27, %28 : vector<10x32xf32>
    %c0_12 = arith.constant 0 : index
    %c0_13 = arith.constant 0 : index
    %c0_14 = arith.constant 0 : index
    %30 = vector.load %arg10[%c0_12, %c0_13, %c0_14] : memref<1x32x32xf32, #tpu.memory_space<vmem>>, vector<1x32x32xf32>
    %31 = vector.shape_cast %30 : vector<1x32x32xf32> to vector<32x32xf32>
    %cst_15 = arith.constant dense<0.000000e+00> : vector<10x32xf32>
    %32 = tpu.matmul %29, %31, %cst_15 {dimension_numbers = #tpu.dot_dimension_numbers<[1], [0], [0], [1], [0, 0, 1, 1], [], []>} : vector<10x32xf32>, vector<32x32xf32>, vector<10x32xf32> -> vector<10x32xf32>
    %c0_16 = arith.constant 0 : index
    %c0_17 = arith.constant 0 : index
    %c0_18 = arith.constant 0 : index
    %33 = vector.load %arg11[%c0_16, %c0_17, %c0_18] : memref<1x1x32xf32, #tpu.memory_space<vmem>>, vector<1x1x32xf32>
    %34 = vector.shape_cast %33 : vector<1x1x32xf32> to vector<1x32xf32>
    %35 = vector.broadcast %34 : vector<1x32xf32> to vector<10x32xf32>
    %36 = arith.addf %32, %35 : vector<10x32xf32>
    %c0_19 = arith.constant 0 : index
    %c0_20 = arith.constant 0 : index
    %c0_21 = arith.constant 0 : index
    %37 = vector.load %arg12[%c0_19, %c0_20, %c0_21] : memref<1x32x32xf32, #tpu.memory_space<vmem>>, vector<1x32x32xf32>
    %38 = vector.shape_cast %37 : vector<1x32x32xf32> to vector<32x32xf32>
    %cst_22 = arith.constant dense<0.000000e+00> : vector<10x32xf32>
    %39 = tpu.matmul %29, %38, %cst_22 {dimension_numbers = #tpu.dot_dimension_numbers<[1], [0], [0], [1], [0, 0, 1, 1], [], []>} : vector<10x32xf32>, vector<32x32xf32>, vector<10x32xf32> -> vector<10x32xf32>
    %c0_23 = arith.constant 0 : index
    %c0_24 = arith.constant 0 : index
    %c0_25 = arith.constant 0 : index
    %40 = vector.load %arg13[%c0_23, %c0_24, %c0_25] : memref<1x1x32xf32, #tpu.memory_space<vmem>>, vector<1x1x32xf32>
    %41 = vector.shape_cast %40 : vector<1x1x32xf32> to vector<1x32xf32>
    %42 = vector.broadcast %41 : vector<1x32xf32> to vector<10x32xf32>
    %43 = arith.addf %39, %42 : vector<10x32xf32>
    %c0_26 = arith.constant 0 : index
    %c0_27 = arith.constant 0 : index
    %c0_28 = arith.constant 0 : index
    %44 = vector.load %arg14[%c0_26, %c0_27, %c0_28] : memref<1x32x32xf32, #tpu.memory_space<vmem>>, vector<1x32x32xf32>
    %45 = vector.shape_cast %44 : vector<1x32x32xf32> to vector<32x32xf32>
    %cst_29 = arith.constant dense<0.000000e+00> : vector<10x32xf32>
    %46 = tpu.matmul %29, %45, %cst_29 {dimension_numbers = #tpu.dot_dimension_numbers<[1], [0], [0], [1], [0, 0, 1, 1], [], []>} : vector<10x32xf32>, vector<32x32xf32>, vector<10x32xf32> -> vector<10x32xf32>
    %c0_30 = arith.constant 0 : index
    %c0_31 = arith.constant 0 : index
    %c0_32 = arith.constant 0 : index
    %47 = vector.load %arg15[%c0_30, %c0_31, %c0_32] : memref<1x1x32xf32, #tpu.memory_space<vmem>>, vector<1x1x32xf32>
    %48 = vector.shape_cast %47 : vector<1x1x32xf32> to vector<1x32xf32>
    %49 = vector.broadcast %48 : vector<1x32xf32> to vector<10x32xf32>
    %50 = arith.addf %46, %49 : vector<10x32xf32>
    %c0_33 = arith.constant 0 : index
    %c0_34 = arith.constant 0 : index
    %51 = vector.load %arg7[%c0_33, %c0_34] : memref<10x10xf32, #tpu.memory_space<vmem>>, vector<10x10xf32>
    %52 = vector.extract_strided_slice %36 {offsets = [0, 0], sizes = [10, 8], strides = [1, 1]} : vector<10x32xf32> to vector<10x8xf32>
    %53 = vector.extract_strided_slice %43 {offsets = [0, 0], sizes = [10, 8], strides = [1, 1]} : vector<10x32xf32> to vector<10x8xf32>
    %54 = vector.extract_strided_slice %50 {offsets = [0, 0], sizes = [10, 8], strides = [1, 1]} : vector<10x32xf32> to vector<10x8xf32>
    %cst_35 = arith.constant dense<0.000000e+00> : vector<10x10xf32>
    %55 = tpu.matmul %52, %53, %cst_35 {dimension_numbers = #tpu.dot_dimension_numbers<[1], [1], [0], [0], [0, 0, 1, 0], [], []>} : vector<10x8xf32>, vector<10x8xf32>, vector<10x10xf32> -> vector<10x10xf32>
    %56 = arith.addf %55, %51 : vector<10x10xf32>
    %cst_36 = arith.constant dense<0xFF800000> : vector<10xf32>
    %57 = vector.multi_reduction <maximumf>, %56, %cst_36 [1] : vector<10x10xf32> to vector<10xf32>
    %58 = vector.shape_cast %57 : vector<10xf32> to vector<10x1xf32>
    %59 = vector.broadcast %58 : vector<10x1xf32> to vector<10x10xf32>
    %60 = arith.subf %56, %59 : vector<10x10xf32>
    %61 = math.exp %60 : vector<10x10xf32>
    %cst_37 = arith.constant dense<0.000000e+00> : vector<10xf32>
    %62 = vector.multi_reduction <add>, %61, %cst_37 [1] : vector<10x10xf32> to vector<10xf32>
    %63 = vector.shape_cast %62 : vector<10xf32> to vector<10x1xf32>
    %64 = tpu.reciprocal %63 {approx = true} : vector<10x1xf32> -> vector<10x1xf32>
    %65 = vector.broadcast %64 : vector<10x1xf32> to vector<10x10xf32>
    %66 = arith.mulf %61, %65 : vector<10x10xf32>
    %cst_38 = arith.constant dense<0.000000e+00> : vector<10x8xf32>
    %67 = tpu.matmul %66, %54, %cst_38 {dimension_numbers = #tpu.dot_dimension_numbers<[1], [0], [0], [1], [0, 0, 1, 1], [], []>} : vector<10x10xf32>, vector<10x8xf32>, vector<10x8xf32> -> vector<10x8xf32>
    %68 = vector.extract_strided_slice %36 {offsets = [0, 8], sizes = [10, 8], strides = [1, 1]} : vector<10x32xf32> to vector<10x8xf32>
    %69 = vector.extract_strided_slice %43 {offsets = [0, 8], sizes = [10, 8], strides = [1, 1]} : vector<10x32xf32> to vector<10x8xf32>
    %70 = vector.extract_strided_slice %50 {offsets = [0, 8], sizes = [10, 8], strides = [1, 1]} : vector<10x32xf32> to vector<10x8xf32>
    %cst_39 = arith.constant dense<0.000000e+00> : vector<10x10xf32>
    %71 = tpu.matmul %68, %69, %cst_39 {dimension_numbers = #tpu.dot_dimension_numbers<[1], [1], [0], [0], [0, 0, 1, 0], [], []>} : vector<10x8xf32>, vector<10x8xf32>, vector<10x10xf32> -> vector<10x10xf32>
    %72 = arith.addf %71, %51 : vector<10x10xf32>
    %cst_40 = arith.constant dense<0xFF800000> : vector<10xf32>
    %73 = vector.multi_reduction <maximumf>, %72, %cst_40 [1] : vector<10x10xf32> to vector<10xf32>
    %74 = vector.shape_cast %73 : vector<10xf32> to vector<10x1xf32>
    %75 = vector.broadcast %74 : vector<10x1xf32> to vector<10x10xf32>
    %76 = arith.subf %72, %75 : vector<10x10xf32>
    %77 = math.exp %76 : vector<10x10xf32>
    %cst_41 = arith.constant dense<0.000000e+00> : vector<10xf32>
    %78 = vector.multi_reduction <add>, %77, %cst_41 [1] : vector<10x10xf32> to vector<10xf32>
    %79 = vector.shape_cast %78 : vector<10xf32> to vector<10x1xf32>
    %80 = tpu.reciprocal %79 {approx = true} : vector<10x1xf32> -> vector<10x1xf32>
    %81 = vector.broadcast %80 : vector<10x1xf32> to vector<10x10xf32>
    %82 = arith.mulf %77, %81 : vector<10x10xf32>
    %cst_42 = arith.constant dense<0.000000e+00> : vector<10x8xf32>
    %83 = tpu.matmul %82, %70, %cst_42 {dimension_numbers = #tpu.dot_dimension_numbers<[1], [0], [0], [1], [0, 0, 1, 1], [], []>} : vector<10x10xf32>, vector<10x8xf32>, vector<10x8xf32> -> vector<10x8xf32>
    %84 = vector.extract_strided_slice %36 {offsets = [0, 16], sizes = [10, 8], strides = [1, 1]} : vector<10x32xf32> to vector<10x8xf32>
    %85 = vector.extract_strided_slice %43 {offsets = [0, 16], sizes = [10, 8], strides = [1, 1]} : vector<10x32xf32> to vector<10x8xf32>
    %86 = vector.extract_strided_slice %50 {offsets = [0, 16], sizes = [10, 8], strides = [1, 1]} : vector<10x32xf32> to vector<10x8xf32>
    %cst_43 = arith.constant dense<0.000000e+00> : vector<10x10xf32>
    %87 = tpu.matmul %84, %85, %cst_43 {dimension_numbers = #tpu.dot_dimension_numbers<[1], [1], [0], [0], [0, 0, 1, 0], [], []>} : vector<10x8xf32>, vector<10x8xf32>, vector<10x10xf32> -> vector<10x10xf32>
    %88 = arith.addf %87, %51 : vector<10x10xf32>
    %cst_44 = arith.constant dense<0xFF800000> : vector<10xf32>
    %89 = vector.multi_reduction <maximumf>, %88, %cst_44 [1] : vector<10x10xf32> to vector<10xf32>
    %90 = vector.shape_cast %89 : vector<10xf32> to vector<10x1xf32>
    %91 = vector.broadcast %90 : vector<10x1xf32> to vector<10x10xf32>
    %92 = arith.subf %88, %91 : vector<10x10xf32>
    %93 = math.exp %92 : vector<10x10xf32>
    %cst_45 = arith.constant dense<0.000000e+00> : vector<10xf32>
    %94 = vector.multi_reduction <add>, %93, %cst_45 [1] : vector<10x10xf32> to vector<10xf32>
    %95 = vector.shape_cast %94 : vector<10xf32> to vector<10x1xf32>
    %96 = tpu.reciprocal %95 {approx = true} : vector<10x1xf32> -> vector<10x1xf32>
    %97 = vector.broadcast %96 : vector<10x1xf32> to vector<10x10xf32>
    %98 = arith.mulf %93, %97 : vector<10x10xf32>
    %cst_46 = arith.constant dense<0.000000e+00> : vector<10x8xf32>
    %99 = tpu.matmul %98, %86, %cst_46 {dimension_numbers = #tpu.dot_dimension_numbers<[1], [0], [0], [1], [0, 0, 1, 1], [], []>} : vector<10x10xf32>, vector<10x8xf32>, vector<10x8xf32> -> vector<10x8xf32>
    %100 = vector.extract_strided_slice %36 {offsets = [0, 24], sizes = [10, 8], strides = [1, 1]} : vector<10x32xf32> to vector<10x8xf32>
    %101 = vector.extract_strided_slice %43 {offsets = [0, 24], sizes = [10, 8], strides = [1, 1]} : vector<10x32xf32> to vector<10x8xf32>
    %102 = vector.extract_strided_slice %50 {offsets = [0, 24], sizes = [10, 8], strides = [1, 1]} : vector<10x32xf32> to vector<10x8xf32>
    %cst_47 = arith.constant dense<0.000000e+00> : vector<10x10xf32>
    %103 = tpu.matmul %100, %101, %cst_47 {dimension_numbers = #tpu.dot_dimension_numbers<[1], [1], [0], [0], [0, 0, 1, 0], [], []>} : vector<10x8xf32>, vector<10x8xf32>, vector<10x10xf32> -> vector<10x10xf32>
    %104 = arith.addf %103, %51 : vector<10x10xf32>
    %cst_48 = arith.constant dense<0xFF800000> : vector<10xf32>
    %105 = vector.multi_reduction <maximumf>, %104, %cst_48 [1] : vector<10x10xf32> to vector<10xf32>
    %106 = vector.shape_cast %105 : vector<10xf32> to vector<10x1xf32>
    %107 = vector.broadcast %106 : vector<10x1xf32> to vector<10x10xf32>
    %108 = arith.subf %104, %107 : vector<10x10xf32>
    %109 = math.exp %108 : vector<10x10xf32>
    %cst_49 = arith.constant dense<0.000000e+00> : vector<10xf32>
    %110 = vector.multi_reduction <add>, %109, %cst_49 [1] : vector<10x10xf32> to vector<10xf32>
    %111 = vector.shape_cast %110 : vector<10xf32> to vector<10x1xf32>
    %112 = tpu.reciprocal %111 {approx = true} : vector<10x1xf32> -> vector<10x1xf32>
    %113 = vector.broadcast %112 : vector<10x1xf32> to vector<10x10xf32>
    %114 = arith.mulf %109, %113 : vector<10x10xf32>
    %cst_50 = arith.constant dense<0.000000e+00> : vector<10x8xf32>
    %115 = tpu.matmul %114, %102, %cst_50 {dimension_numbers = #tpu.dot_dimension_numbers<[1], [0], [0], [1], [0, 0, 1, 1], [], []>} : vector<10x10xf32>, vector<10x8xf32>, vector<10x8xf32> -> vector<10x8xf32>
    %116 = tpu.concatenate %67, %83, %99, %115 in 1 : vector<10x8xf32>, vector<10x8xf32>, vector<10x8xf32>, vector<10x8xf32> -> vector<10x32xf32>
    %c0_51 = arith.constant 0 : index
    %c0_52 = arith.constant 0 : index
    %c0_53 = arith.constant 0 : index
    %117 = vector.load %arg16[%c0_51, %c0_52, %c0_53] : memref<1x32x32xf32, #tpu.memory_space<vmem>>, vector<1x32x32xf32>
    %118 = vector.shape_cast %117 : vector<1x32x32xf32> to vector<32x32xf32>
    %cst_54 = arith.constant dense<0.000000e+00> : vector<10x32xf32>
    %119 = tpu.matmul %116, %118, %cst_54 {dimension_numbers = #tpu.dot_dimension_numbers<[1], [0], [0], [1], [0, 0, 1, 1], [], []>} : vector<10x32xf32>, vector<32x32xf32>, vector<10x32xf32> -> vector<10x32xf32>
    %c0_55 = arith.constant 0 : index
    %c0_56 = arith.constant 0 : index
    %c0_57 = arith.constant 0 : index
    %120 = vector.load %arg17[%c0_55, %c0_56, %c0_57] : memref<1x1x32xf32, #tpu.memory_space<vmem>>, vector<1x1x32xf32>
    %121 = vector.shape_cast %120 : vector<1x1x32xf32> to vector<1x32xf32>
    %122 = vector.broadcast %121 : vector<1x32xf32> to vector<10x32xf32>
    %123 = arith.addf %119, %122 : vector<10x32xf32>
    %124 = arith.addf %3, %123 : vector<10x32xf32>
    %c0_58 = arith.constant 0 : index
    %c0_59 = arith.constant 0 : index
    %c0_60 = arith.constant 0 : index
    %125 = vector.load %arg18[%c0_58, %c0_59, %c0_60] : memref<1x1x32xf32, #tpu.memory_space<vmem>>, vector<1x1x32xf32>
    %126 = vector.shape_cast %125 : vector<1x1x32xf32> to vector<1x32xf32>
    %c0_61 = arith.constant 0 : index
    %c0_62 = arith.constant 0 : index
    %c0_63 = arith.constant 0 : index
    %127 = vector.load %arg19[%c0_61, %c0_62, %c0_63] : memref<1x1x32xf32, #tpu.memory_space<vmem>>, vector<1x1x32xf32>
    %128 = vector.shape_cast %127 : vector<1x1x32xf32> to vector<1x32xf32>
    %cst_64 = arith.constant dense<0.000000e+00> : vector<10xf32>
    %129 = vector.multi_reduction <add>, %124, %cst_64 [1] : vector<10x32xf32> to vector<10xf32>
    %130 = vector.shape_cast %129 : vector<10xf32> to vector<10x1xf32>
    %cst_65 = arith.constant 3.200000e+01 : f32
    %131 = vector.broadcast %cst_65 : f32 to vector<10x1xf32>
    %132 = arith.divf %130, %131 : vector<10x1xf32>
    %133 = vector.broadcast %132 : vector<10x1xf32> to vector<10x32xf32>
    %134 = arith.subf %124, %133 : vector<10x32xf32>
    %135 = arith.mulf %134, %134 : vector<10x32xf32>
    %cst_66 = arith.constant dense<0.000000e+00> : vector<10xf32>
    %136 = vector.multi_reduction <add>, %135, %cst_66 [1] : vector<10x32xf32> to vector<10xf32>
    %137 = vector.shape_cast %136 : vector<10xf32> to vector<10x1xf32>
    %cst_67 = arith.constant 3.200000e+01 : f32
    %138 = vector.broadcast %cst_67 : f32 to vector<10x1xf32>
    %139 = arith.divf %137, %138 : vector<10x1xf32>
    %140 = vector.broadcast %132 : vector<10x1xf32> to vector<10x32xf32>
    %141 = arith.subf %124, %140 : vector<10x32xf32>
    %cst_68 = arith.constant 9.99999974E-6 : f32
    %142 = vector.broadcast %cst_68 : f32 to vector<10x1xf32>
    %143 = arith.addf %139, %142 : vector<10x1xf32>
    %144 = math.rsqrt %143 : vector<10x1xf32>
    %145 = vector.broadcast %144 : vector<10x1xf32> to vector<10x32xf32>
    %146 = arith.mulf %141, %145 : vector<10x32xf32>
    %147 = vector.broadcast %126 : vector<1x32xf32> to vector<10x32xf32>
    %148 = arith.mulf %146, %147 : vector<10x32xf32>
    %149 = vector.broadcast %128 : vector<1x32xf32> to vector<10x32xf32>
    %150 = arith.addf %148, %149 : vector<10x32xf32>
    %c0_69 = arith.constant 0 : index
    %c0_70 = arith.constant 0 : index
    %c0_71 = arith.constant 0 : index
    %151 = vector.load %arg20[%c0_69, %c0_70, %c0_71] : memref<1x32x64xf32, #tpu.memory_space<vmem>>, vector<1x32x64xf32>
    %152 = vector.shape_cast %151 : vector<1x32x64xf32> to vector<32x64xf32>
    %cst_72 = arith.constant dense<0.000000e+00> : vector<10x64xf32>
    %153 = tpu.matmul %150, %152, %cst_72 {dimension_numbers = #tpu.dot_dimension_numbers<[1], [0], [0], [1], [0, 0, 1, 1], [], []>} : vector<10x32xf32>, vector<32x64xf32>, vector<10x64xf32> -> vector<10x64xf32>
    %c0_73 = arith.constant 0 : index
    %c0_74 = arith.constant 0 : index
    %c0_75 = arith.constant 0 : index
    %154 = vector.load %arg21[%c0_73, %c0_74, %c0_75] : memref<1x1x64xf32, #tpu.memory_space<vmem>>, vector<1x1x64xf32>
    %155 = vector.shape_cast %154 : vector<1x1x64xf32> to vector<1x64xf32>
    %156 = vector.broadcast %155 : vector<1x64xf32> to vector<10x64xf32>
    %157 = arith.addf %153, %156 : vector<10x64xf32>
    %cst_76 = arith.constant 1.702000e+00 : f32
    %158 = vector.broadcast %cst_76 : f32 to vector<10x64xf32>
    %159 = arith.mulf %158, %157 : vector<10x64xf32>
    %160 = arith.negf %159 : vector<10x64xf32>
    %161 = math.exp %160 : vector<10x64xf32>
    %cst_77 = arith.constant 1.000000e+00 : f32
    %162 = vector.broadcast %cst_77 : f32 to vector<10x64xf32>
    %163 = arith.addf %162, %161 : vector<10x64xf32>
    %164 = arith.divf %162, %163 : vector<10x64xf32>
    %165 = arith.mulf %157, %164 : vector<10x64xf32>
    %c0_78 = arith.constant 0 : index
    %c0_79 = arith.constant 0 : index
    %c0_80 = arith.constant 0 : index
    %166 = vector.load %arg22[%c0_78, %c0_79, %c0_80] : memref<1x64x32xf32, #tpu.memory_space<vmem>>, vector<1x64x32xf32>
    %167 = vector.shape_cast %166 : vector<1x64x32xf32> to vector<64x32xf32>
    %cst_81 = arith.constant dense<0.000000e+00> : vector<10x32xf32>
    %168 = tpu.matmul %165, %167, %cst_81 {dimension_numbers = #tpu.dot_dimension_numbers<[1], [0], [0], [1], [0, 0, 1, 1], [], []>} : vector<10x64xf32>, vector<64x32xf32>, vector<10x32xf32> -> vector<10x32xf32>
    %c0_82 = arith.constant 0 : index
    %c0_83 = arith.constant 0 : index
    %c0_84 = arith.constant 0 : index
    %169 = vector.load %arg23[%c0_82, %c0_83, %c0_84] : memref<1x1x32xf32, #tpu.memory_space<vmem>>, vector<1x1x32xf32>
    %170 = vector.shape_cast %169 : vector<1x1x32xf32> to vector<1x32xf32>
    %171 = vector.broadcast %170 : vector<1x32xf32> to vector<10x32xf32>
    %172 = arith.addf %168, %171 : vector<10x32xf32>
    %173 = arith.addf %124, %172 : vector<10x32xf32>
    %c0_85 = arith.constant 0 : index
    %c0_86 = arith.constant 0 : index
    %174 = vector.load %arg24[%c0_85, %c0_86] : memref<10x32xf32, #tpu.memory_space<vmem>>, vector<10x32xf32>
    tpu.vector_store %arg24[%c0_85, %c0_86], %173 {strides = array<i32>} : memref<10x32xf32, #tpu.memory_space<vmem>>, vector<10x32xf32>,
    return
  }
  func.func @transform_0(%arg0: i32) -> (i32, i32) {
    %c0_i32 = arith.constant 0 : i32
    %c0_i32_0 = arith.constant 0 : i32
    %c0_i32_1 = arith.constant 0 : i32
    return %c0_i32, %c0_i32_0 : i32, i32
  }
  func.func @transform_1(%arg0: i32) -> (i32, i32) {
    %c0_i32 = arith.constant 0 : i32
    %c0_i32_0 = arith.constant 0 : i32
    %c0_i32_1 = arith.constant 0 : i32
    return %c0_i32, %c0_i32_0 : i32, i32
  }
  func.func @transform_2(%arg0: i32) -> (i32, i32) {
    %c0_i32 = arith.constant 0 : i32
    %c0_i32_0 = arith.constant 0 : i32
    %c0_i32_1 = arith.constant 0 : i32
    return %c0_i32, %c0_i32_0 : i32, i32
  }
  func.func @transform_3(%arg0: i32) -> (i32, i32) {
    %c0_i32 = arith.constant 0 : i32
    %c0_i32_0 = arith.constant 0 : i32
    %c0_i32_1 = arith.constant 0 : i32
    return %c0_i32, %c0_i32_0 : i32, i32
  }
  func.func @transform_4(%arg0: i32) -> (i32, i32) {
    %c0_i32 = arith.constant 0 : i32
    %c0_i32_0 = arith.constant 0 : i32
    %c0_i32_1 = arith.constant 0 : i32
    return %c0_i32, %c0_i32_0 : i32, i32
  }
  func.func @transform_5(%arg0: i32) -> (i32, i32) {
    %c0_i32 = arith.constant 0 : i32
    %c0_i32_0 = arith.constant 0 : i32
    %c0_i32_1 = arith.constant 0 : i32
    return %c0_i32, %c0_i32_0 : i32, i32
  }
  func.func @transform_6(%arg0: i32) -> (i32, i32) {
    %c0_i32 = arith.constant 0 : i32
    %c0_i32_0 = arith.constant 0 : i32
    %c0_i32_1 = arith.constant 0 : i32
    return %c0_i32, %c0_i32_0 : i32, i32
  }
  func.func @transform_7(%arg0: i32) -> (i32, i32, i32) {
    %c0_i32 = arith.constant 0 : i32
    %c0_i32_0 = arith.constant 0 : i32
    %c0_i32_1 = arith.constant 0 : i32
    return %arg0, %c0_i32, %c0_i32_0 : i32, i32, i32
  }
  func.func @transform_8(%arg0: i32) -> (i32, i32, i32) {
    %c0_i32 = arith.constant 0 : i32
    %c0_i32_0 = arith.constant 0 : i32
    %c0_i32_1 = arith.constant 0 : i32
    return %arg0, %c0_i32, %c0_i32_0 : i32, i32, i32
  }
  func.func @transform_9(%arg0: i32) -> (i32, i32, i32) {
    %c0_i32 = arith.constant 0 : i32
    %c0_i32_0 = arith.constant 0 : i32
    %c0_i32_1 = arith.constant 0 : i32
    return %arg0, %c0_i32, %c0_i32_0 : i32, i32, i32
  }
  func.func @transform_10(%arg0: i32) -> (i32, i32, i32) {
    %c0_i32 = arith.constant 0 : i32
    %c0_i32_0 = arith.constant 0 : i32
    %c0_i32_1 = arith.constant 0 : i32
    return %arg0, %c0_i32, %c0_i32_0 : i32, i32, i32
  }
  func.func @transform_11(%arg0: i32) -> (i32, i32, i32) {
    %c0_i32 = arith.constant 0 : i32
    %c0_i32_0 = arith.constant 0 : i32
    %c0_i32_1 = arith.constant 0 : i32
    return %arg0, %c0_i32, %c0_i32_0 : i32, i32, i32
  }
  func.func @transform_12(%arg0: i32) -> (i32, i32, i32) {
    %c0_i32 = arith.constant 0 : i32
    %c0_i32_0 = arith.constant 0 : i32
    %c0_i32_1 = arith.constant 0 : i32
    return %arg0, %c0_i32, %c0_i32_0 : i32, i32, i32
  }
  func.func @transform_13(%arg0: i32) -> (i32, i32, i32) {
    %c0_i32 = arith.constant 0 : i32
    %c0_i32_0 = arith.constant 0 : i32
    %c0_i32_1 = arith.constant 0 : i32
    return %arg0, %c0_i32, %c0_i32_0 : i32, i32, i32
  }
  func.func @transform_14(%arg0: i32) -> (i32, i32, i32) {
    %c0_i32 = arith.constant 0 : i32
    %c0_i32_0 = arith.constant 0 : i32
    %c0_i32_1 = arith.constant 0 : i32
    return %arg0, %c0_i32, %c0_i32_0 : i32, i32, i32
  }
  func.func @transform_15(%arg0: i32) -> (i32, i32, i32) {
    %c0_i32 = arith.constant 0 : i32
    %c0_i32_0 = arith.constant 0 : i32
    %c0_i32_1 = arith.constant 0 : i32
    return %arg0, %c0_i32, %c0_i32_0 : i32, i32, i32
  }
  func.func @transform_16(%arg0: i32) -> (i32, i32, i32) {
    %c0_i32 = arith.constant 0 : i32
    %c0_i32_0 = arith.constant 0 : i32
    %c0_i32_1 = arith.constant 0 : i32
    return %arg0, %c0_i32, %c0_i32_0 : i32, i32, i32
  }
  func.func @transform_17(%arg0: i32) -> (i32, i32, i32) {
    %c0_i32 = arith.constant 0 : i32
    %c0_i32_0 = arith.constant 0 : i32
    %c0_i32_1 = arith.constant 0 : i32
    return %arg0, %c0_i32, %c0_i32_0 : i32, i32, i32
  }
  func.func @transform_18(%arg0: i32) -> (i32, i32, i32) {
    %c0_i32 = arith.constant 0 : i32
    %c0_i32_0 = arith.constant 0 : i32
    %c0_i32_1 = arith.constant 0 : i32
    return %arg0, %c0_i32, %c0_i32_0 : i32, i32, i32
  }
  func.func @transform_19(%arg0: i32) -> (i32, i32, i32) {
    %c0_i32 = arith.constant 0 : i32
    %c0_i32_0 = arith.constant 0 : i32
    %c0_i32_1 = arith.constant 0 : i32
    return %arg0, %c0_i32, %c0_i32_0 : i32, i32, i32
  }
  func.func @transform_20(%arg0: i32) -> (i32, i32, i32) {
    %c0_i32 = arith.constant 0 : i32
    %c0_i32_0 = arith.constant 0 : i32
    %c0_i32_1 = arith.constant 0 : i32
    return %arg0, %c0_i32, %c0_i32_0 : i32, i32, i32
  }
  func.func @transform_21(%arg0: i32) -> (i32, i32, i32) {
    %c0_i32 = arith.constant 0 : i32
    %c0_i32_0 = arith.constant 0 : i32
    %c0_i32_1 = arith.constant 0 : i32
    return %arg0, %c0_i32, %c0_i32_0 : i32, i32, i32
  }
  func.func @transform_22(%arg0: i32) -> (i32, i32, i32) {
    %c0_i32 = arith.constant 0 : i32
    %c0_i32_0 = arith.constant 0 : i32
    %c0_i32_1 = arith.constant 0 : i32
    return %arg0, %c0_i32, %c0_i32_0 : i32, i32, i32
  }
  func.func @transform_23(%arg0: i32) -> (i32, i32) {
    %c0_i32 = arith.constant 0 : i32
    %c0_i32_0 = arith.constant 0 : i32
    %c0_i32_1 = arith.constant 0 : i32
    return %c0_i32, %c0_i32_0 : i32, i32
  }
}

</mosaic_0001>

<bundles_post_ra>
// kernel: tpu_custom_call.1
= control target key start
LH: loop header
LB: loop body
LE: loop exit
PB: predicated region body
PF: predicated region fallthrough
CT: control target
= control target key end

     0   :  { %s2869_s0 = inlined_call_operand.vmem [shape: f32[8,192], index: 0, kind: input, shape index: {}]   ;;  %s2870_s1 = inlined_call_operand.vmem [shape: f32[192,32], index: 1, kind: input, shape index: {}]   ;;  %s2871_s2 = inlined_call_operand.vmem [shape: f32[1,32], index: 2, kind: input, shape index: {}]   ;;  %s2872_s3 = inlined_call_operand.vmem [shape: f32[5,32], index: 3, kind: input, shape index: {}]   ;;  %s2873_s4 = inlined_call_operand.vmem [shape: f32[1,32], index: 4, kind: input, shape index: {}]   ;;  %s2874_s5 = inlined_call_operand.vmem [shape: f32[1,32], index: 5, kind: input, shape index: {}]   ;;  %s2875_s6 = inlined_call_operand.vmem [shape: f32[10,10], index: 6, kind: input, shape index: {}]   ;;  %s2876_s7 = inlined_call_operand.vmem [shape: f32[2,1,32], index: 7, kind: input, shape index: {}]   ;;  %s2877_s8 = inlined_call_operand.vmem [shape: f32[2,1,32], index: 8, kind: input, shape index: {}]   ;;  %s2878_s9 = inlined_call_operand.vmem [shape: f32[2,32,32], index: 9, kind: input, shape index: {}]   ;;  %s2879_s10 = inlined_call_operand.vmem [shape: f32[2,1,32], index: 10, kind: input, shape index: {}]   ;;  %s2880_s11 = inlined_call_operand.vmem [shape: f32[2,32,32], index: 11, kind: input, shape index: {}]   ;;  %s2881_s12 = inlined_call_operand.vmem [shape: f32[2,1,32], index: 12, kind: input, shape index: {}]   ;;  %s2882_s13 = inlined_call_operand.vmem [shape: f32[2,32,32], index: 13, kind: input, shape index: {}]   ;;  %s2883_s14 = inlined_call_operand.vmem [shape: f32[2,1,32], index: 14, kind: input, shape index: {}]   ;;  %s2884_s15 = inlined_call_operand.vmem [shape: f32[2,32,32], index: 15, kind: input, shape index: {}]   ;;  %s2885_s16 = inlined_call_operand.vmem [shape: f32[2,1,32], index: 16, kind: input, shape index: {}]   ;;  %s2886_s17 = inlined_call_operand.vmem [shape: f32[2,1,32], index: 17, kind: input, shape index: {}]   ;;  %s2887_s18 = inlined_call_operand.vmem [shape: f32[2,1,32], index: 18, kind: input, shape index: {}]   ;;  %s2888_s19 = inlined_call_operand.vmem [shape: f32[2,32,64], index: 19, kind: input, shape index: {}]   ;;  %s2889_s20 = inlined_call_operand.vmem [shape: f32[2,1,64], index: 20, kind: input, shape index: {}]   ;;  %s2890_s21 = inlined_call_operand.vmem [shape: f32[2,64,32], index: 21, kind: input, shape index: {}]   ;;  %s2891_s22 = inlined_call_operand.vmem [shape: f32[2,1,32], index: 22, kind: input, shape index: {}]   ;;  %s2892_s23 = inlined_call_operand.hbm [shape: f32[10,32], index: 23, kind: output, shape index: {}]  }
   0x1   :  { %2899 = sst [smem:[#allocation7_spill]] %s2869_s0 }
   0x2   :  { %2900 = sst [smem:[#allocation8_spill]] %s2870_s1 }
   0x3   :  { %2901 = sst [smem:[#allocation9_spill]] %s2871_s2 }
   0x4   :  { %2902 = sst [smem:[#allocation10_spill]] %s2872_s3 }
   0x5   :  { %2903 = sst [smem:[#allocation11_spill]] %s2873_s4 }
   0x6   :  { %2904 = sst [smem:[#allocation12_spill]] %s2874_s5 }
   0x7   :  { %2905 = sst [smem:[#allocation13_spill]] %s2875_s6 }
   0x8   :  { %2906 = sst [smem:[#allocation14_spill]] %s2876_s7 }
   0x9   :  { %2907 = sst [smem:[#allocation15_spill]] %s2877_s8 }
   0xa   :  { %2908 = sst [smem:[#allocation16_spill]] %s2878_s9 }
   0xb   :  { %2909 = sst [smem:[#allocation17_spill]] %s2880_s11 }
   0xc   :  { %2910 = sst [smem:[#allocation18_spill]] %s2881_s12 }
   0xd   :  { %2911 = sst [smem:[#allocation19_spill]] %s2882_s13 }
   0xe   :  { %2912 = sst [smem:[#allocation20_spill]] %s2884_s15 }
   0xf   :  { %2913 = sst [smem:[#allocation21_spill]] %s2892_s23 }
  0x10   :  { %28 = vsyncpa [#allocation3], 0  ;;  %s2447_s4 = smov 0  }
  0x11 LB: > { %2914 = sst [smem:[#allocation5_spill]] %s2315_s4  ;;  %s2453_s30 = sadd.s32 4294967295, %s2315_s4   ;;  %s2315_s4 = sphi %s2447_s4, %s34_s4  }
  0x12   : > { %2915 = sst [smem:[#allocation6_spill]] %s2453_s30  ;;  %p2110_p0 = scmp.ge.s32.totalorder %s2315_s4, 1 }
  0x13   : > { %p763_p1 = scmp.lt.s32.totalorder %s2315_s4, 3 }
  0x15   : > { %p764_p2 = pnand %p2110_p0, %p763_p1 }
  0x16   : > { %p877_p3 = scmp.lt.s32.totalorder (!%p764_p2), %s2453_s30, 1  ;;  %s2918_s9 = sld [smem:[#allocation16_spill]] (!%p764_p2) }
  0x17   : > { %767 = sbr.rel (%p764_p2) target bundleno = 2397 (0x95d), region = 112  ;;  %s2919_s11 = sld [smem:[#allocation17_spill]] (!%p764_p2) }
  0x18   : > { %s2921_s13 = sld [smem:[#allocation19_spill]] (!%p764_p2) }
  0x19   : > { %s2922_s15 = sld [smem:[#allocation20_spill]] (!%p764_p2) }
  0x1a   : > { %s2923_s6 = sld [smem:[#allocation6_spill]] (!%p764_p2) }
  0x1c   : > { %s2459_s24 = scalar_select %p877_p3, %s2453_s30, 1 }
  0x1e   : > { %s2171_s7 = sshll.u32 %s2459_s24, 5  ;;  %s917_s2 = scalar_lea.vmem %s2886_s17, %s2459_s24 }
  0x1f   : > { %s2477_s5 = scalar_lea.vmem %s2918_s9, %s2171_s7  ;;  %s2482_s30 = scalar_lea.vmem %s2919_s11, %s2171_s7 }
  0x20   : > { %s2491_s8 = scalar_lea.vmem %s2921_s13, %s2171_s7  ;;  %s2500_s9 = scalar_lea.vmem %s2922_s15, %s2171_s7 }
  0x21   : > { %s2517_s29 = scalar_lea.vmem %s2888_s19, %s2171_s7  ;;  %s2176_s15 = sshll.u32 %s2459_s24, 6 }
  0x22   : > { %s2527_s11 = scalar_lea.vmem %s2890_s21, %s2176_s15  ;;  %p2123_p4 = scmp.ne.s32.totalorder %s2923_s6, 0 }
  0x23   : > { %s2924_s28 = sld [smem:[#allocation8_spill]] (!%p2123_p4) }
  0x24   : > { %940 = sbr.rel (%p2123_p4) target bundleno = 485 (0x1e5), region = 116  ;;  %s2925_s23 = sld [smem:[#allocation7_spill]] (!%p2123_p4) }
  0x25   : > { %s2926_s13 = sld [smem:[#allocation10_spill]] (!%p2123_p4) }
  0x26   : > { %s2927_s3 = sld [smem:[#allocation9_spill]] (!%p2123_p4) }
  0x27   : > { %s2928_s15 = sld [smem:[#allocation11_spill]] (!%p2123_p4) }
  0x28   : > { %s2929_s1 = sld [smem:[#allocation12_spill]] (!%p2123_p4) }
  0x29   : > { %v958_v0 = vld [vmem:[%s2924_s28 + $0x78] sm:$0xff]  ;;  %v957_v1 = vld [vmem:[%s2924_s28 + $0x70] sm:$0xff]  ;;  %v956_v2 = vld [vmem:[%s2924_s28 + $0x68] sm:$0xff]  ;;  %vm967_vm0 = vcmask 523264   ;;  %vm1029_vm1 = vcmask 1040384   ;;  %vm1031_vm2 = vcmask 1044480  }
  0x2a   : > { %971 = vmatpush.msra.mxu0 %v958_v0  ;;  %v966_v3 = vld [vmem:[%s2924_s28 + $0xb8] sm:$0xff]  ;;  %v965_v4 = vld [vmem:[%s2924_s28 + $0xb0] sm:$0xff]  ;;  %v955_v5 = vld [vmem:[%s2924_s28 + $0x60] sm:$0xff]  ;;  %vm1033_vm3 = vcmask 1045504   ;;  %vm1037_vm4 = vcmask 261120   ;;  %vm1041_vm5 = vcmask 254976  }
  0x2b   : > { %999 = vmatpush.msra.mxu1 %v966_v3  ;;  %v964_v6 = vld [vmem:[%s2924_s28 + $0xa8] sm:$0xff]  ;;  %v954_v7 = vld [vmem:[%s2924_s28 + $0x58] sm:$0xff]  ;;  %v963_v8 = vld [vmem:[%s2924_s28 + $0xa0] sm:$0xff]  ;;  %v2317_v44 = vmov 32.0  }
  0x2c   : > { %972 = vmatpush.msra.mxu0 %v957_v1  ;;  %v953_v9 = vld [vmem:[%s2924_s28 + $0x50] sm:$0xff]  ;;  %v962_v10 = vld [vmem:[%s2924_s28 + $0x98] sm:$0xff]  ;;  %v952_v11 = vld [vmem:[%s2924_s28 + $0x48] sm:$0xff]  ;;  %2211 = vrcp.f32 %v2317_v44 }
  0x2d   : > { %1000 = vmatpush.msra.mxu1 %v965_v4  ;;  %v961_v12 = vld [vmem:[%s2924_s28 + $0x90] sm:$0xff]  ;;  %v951_v13 = vld [vmem:[%s2924_s28 + $0x40] sm:$0xff]  ;;  %v960_v14 = vld [vmem:[%s2924_s28 + $0x88] sm:$0xff] }
  0x2e   : > { %973 = vmatpush.msra.mxu0 %v956_v2  ;;  %v950_v15 = vld [vmem:[%s2924_s28 + $0x38] sm:$0xff]  ;;  %v959_v16 = vld [vmem:[%s2924_s28 + $0x80] sm:$0xff]  ;;  %v949_v17 = vld [vmem:[%s2924_s28 + $0x30] sm:$0xff] }
  0x2f   : > { %1001 = vmatpush.msra.mxu1 %v964_v6  ;;  %v942_v18 = vld [vmem:[%s2925_s23 + $0x8] sm:$0xff]  ;;  %v947_v20 = vld [vmem:[%s2924_s28 + $0x20] sm:$0xff]  ;;  %v946_v21 = vld [vmem:[%s2924_s28 + $0x18] sm:$0xff] }
  0x30   : > { %974 = vmatpush.msra.mxu0 %v955_v5  ;;  %v948_v19 = vld [vmem:[%s2924_s28 + $0x28] sm:$0xff]  ;;  %v945_v22 = vld [vmem:[%s2924_s28 + $0x10] sm:$0xff]  ;;  %v943_v24 = vld [vmem:[%s2924_s28] sm:$0xff] }
  0x31   : > { %1002 = vmatpush.msra.mxu1 %v963_v8  ;;  %v944_v23 = vld [vmem:[%s2924_s28 + $0x8] sm:$0xff]  ;;  %v941_v25 = vld [vmem:[%s2925_s23] sm:$0xff] }
  0x32   : > { %975 = vmatpush.msra.mxu0 %v954_v7  ;;  %v1014_v26 = vld [vmem:[%s2926_s13 + $0x1] sm:$0xf]  ;;  %v1011_v27 = vld [vmem:[%s2927_s3] sm:$0x1]  ;;  %v2212_v45 = vpop.eup %2211 }
  0x33   : > { %1003 = vmatpush.msra.mxu1 %v962_v10  ;;  %v1012_v28 = vld [vmem:[%s2926_s13] sm:$0x1]  ;;  %v1017_v30 = vrot.slane %v1014_v26, 4  ;;  %v1046_v46 = vmul.f32 32.0, %v2212_v45  ;;  %vm1050_vm6 = vweird.f32 %v2212_v45 }
  0x34   : > { %976 = vmatpush.msra.mxu0 %v953_v9  ;;  %v1013_v32 = vadd.f32 %v1012_v28, %v1011_v27 }
  0x35   : > { %1004 = vmatpush.msra.mxu1 %v961_v12  ;;  %v1047_v47 = vsub.f32 1.0, %v1046_v46 }
  0x36   : > { %977 = vmatpush.msra.mxu0 %v952_v11  ;;  %v1024_v36 = vperm.slane %v1013_v32, 0  ;;  %v2209_v11 = vld [vmem:[%s2928_s15] ss:$0 sm:$0xff] }
  0x37   : > { %1005 = vmatpush.msra.mxu1 %v960_v14  ;;  %v1048_v48 = vmul.f32 %v2212_v45, %v1047_v47  ;;  %v2210_v14 = vld [vmem:[%s2929_s1] ss:$0 sm:$0xff] }
  0x38   : > { %978 = vmatpush.msra.mxu0 %v951_v13 }
  0x39   : > { %1006 = vmatpush.msra.mxu1 %v959_v16  ;;  %v1049_v49 = vadd.f32 %v2212_v45, %v1048_v48 }
  0x3a   : > { %979 = vmatpush.msra.mxu0 %v950_v15  ;;  %2124 = vmatmul.msk.f32.vlgmr.msra.gmra.mxu1 %vm967_vm0, %v942_v18 }
  0x3b   : > { %v1051_v50 = vsel %vm1050_vm6, %v2212_v45, %v1049_v49 }
  0x3c   : > { %980 = vmatpush.msra.mxu0 %v949_v17 }
  0x3e   : > { %981 = vmatpush.msra.mxu0 %v948_v19 }
  0x40   : > { %982 = vmatpush.msra.mxu0 %v947_v20 }
  0x42   : > { %983 = vmatpush.msra.mxu0 %v946_v21 }
  0x44   : > { %984 = vmatpush.msra.mxu0 %v945_v22 }
  0x46   : > { %985 = vmatpush.msra.mxu0 %v944_v23 }
  0x48   : > { %986 = vmatpush.msra.mxu0 %v943_v24 }
  0x49   : > { %987 = vmatmul.f32.vlgmr.msra.gmra.mxu0 %v941_v25 }
  0xb7   : > { %v1008_v29 = vpop.f32.mrf.mxu1 }
  0xc6   : > { %v988_v31 = vpop.f32.mrf.mxu0 }
  0xc7   : > { %v1009_v33 = vadd.f32 %v1008_v29, %v988_v31 }
  0xc9   : > { %v1015_v34 = vadd.f32 %v1014_v26, %v1009_v33  ;;  %v1019_v35 = vadd.f32 %v1017_v30, %v1009_v33 }
  0xcb   : > { %v1021_v37 = vrot.slane %v1015_v34, 7  ;;  %v1027_v38 = vrot.slane %v1019_v35, 6 }
  0xcd   : > { %v1030_v39 = vsel %vm1029_vm1, %v1013_v32, %v1021_v37  ;;  %v1042_v43 = vsel %vm1041_vm5, %v1027_v38, 0.0 }
  0xce   : > { %v1032_v40 = vsel %vm1031_vm2, %v1030_v39, %v1024_v36 }
  0xcf   : > { %v1034_v41 = vsel %vm1033_vm3, %v1032_v40, %v1027_v38 }
  0xd0   : > { %v1038_v42 = vsel %vm1037_vm4, %v1034_v41, 0.0 }
  0xd1   : > { %1039 = vadd.xlane.f32.xlu0 %v1038_v42 }
  0xd9   : > { %1043 = vadd.xlane.f32.xlu0 %v1042_v43 }
 0x144   : > { %v1040_v51 = vpop.xlane.xlu0 %1039 }
 0x145   : > { %v1052_v52 = vmul.f32 %v1051_v50, %v1040_v51 }
 0x147   : > { %v1054_v53 = vsub.f32 %v1034_v41, %v1052_v52 }
 0x149   : > { %v1056_v54 = vmul.f32 %v1054_v53, %v1054_v53 }
 0x14b   : > { %v1058_v55 = vsel %vm1037_vm4, %v1056_v54, 0.0 }
 0x14c   : > { %1059 = vadd.xlane.f32.xlu1 %v1058_v55  ;;  %v1044_v56 = vpop.xlane.xlu0 %1043 }
 0x14d   : > { %v1053_v57 = vmul.f32 %v1051_v50, %v1044_v56 }
 0x14f   : > { %v1055_v58 = vsub.f32 %v1027_v38, %v1053_v57 }
 0x151   : > { %v1057_v59 = vmul.f32 %v1055_v58, %v1055_v58 }
 0x153   : > { %v1061_v60 = vsel %vm1041_vm5, %v1057_v59, 0.0 }
 0x154   : > { %1062 = vadd.xlane.f32.xlu1 %v1061_v60 }
 0x1bf   : > { %v1060_v61 = vpop.xlane.xlu1 %1059 }
 0x1c0   : > { %v1064_v62 = vmul.f32 %v1060_v61, %v1051_v50 }
 0x1c2   : > { %v1066_v63 = vadd.f32 1e-05, %v1064_v62 }
 0x1c4   : > { %2213 = vrsqrt.f32 %v1066_v63  ;;  %vm1074_vm8 = vweird.f32 %v1066_v63 }
 0x1c7   : > { %v1063_v0 = vpop.xlane.xlu1 %1062 }
 0x1c8   : > { %v1065_v1 = vmul.f32 %v1063_v0, %v1051_v50 }
 0x1ca   : > { %v2214_v2 = vpop.eup %2213  ;;  %v1067_v3 = vadd.f32 1e-05, %v1065_v1 }
 0x1cb   : > { %v1069_v4 = vmul.f32 %v2214_v2, %v1066_v63  ;;  %vm1075_vm7 = vweird.f32 %v2214_v2 }
 0x1cc   : > { %2215 = vrsqrt.f32 %v1067_v3  ;;  %vm1076_vm9 = vmor %vm1074_vm8, %vm1075_vm7  ;;  %vm1084_vm11 = vweird.f32 %v1067_v3 }
 0x1cd   : > { %v1070_v5 = vmul.f32 %v2214_v2, %v1069_v4 }
 0x1cf   : > { %v1071_v6 = vmul.f32 0.5, %v1070_v5 }
 0x1d1   : > { %v1072_v7 = vsub.f32 1.5, %v1071_v6 }
 0x1d2   : > { %v2216_v8 = vpop.eup %2215 }
 0x1d3   : > { %v1073_v9 = vmul.f32 %v2214_v2, %v1072_v7  ;;  %v1079_v10 = vmul.f32 %v2216_v8, %v1067_v3  ;;  %vm1085_vm10 = vweird.f32 %v2216_v8 }
 0x1d4   : > { %vm1086_vm12 = vmor %vm1084_vm11, %vm1085_vm10 }
 0x1d5   : > { %v1077_v12 = vsel %vm1076_vm9, %v2214_v2, %v1073_v9  ;;  %v1080_v13 = vmul.f32 %v2216_v8, %v1079_v10 }
 0x1d6   : > { %v1088_v15 = vmul.f32 %v1077_v12, %v1054_v53 }
 0x1d7   : > { %v1081_v16 = vmul.f32 0.5, %v1080_v13 }
 0x1d8   : > { %v1093_v17 = vmul.f32 %v2209_v11, %v1088_v15 }
 0x1d9   : > { %v1082_v18 = vsub.f32 1.5, %v1081_v16 }
 0x1da   : > { %v1098_v19 = vadd.f32 %v2210_v14, %v1093_v17 }
 0x1db   : > { %v1083_v20 = vmul.f32 %v2216_v8, %v1082_v18 }
 0x1dc   : > { %1100 = vst.msk [vmem:[#allocation2] sm:$0xff] %vm1037_vm4, %v1098_v19 }
 0x1dd   : > { %v1087_v21 = vsel %vm1086_vm12, %v2216_v8, %v1083_v20 }
 0x1de   : > { %v1089_v22 = vmul.f32 %v1087_v21, %v1055_v58 }
 0x1e0   : > { %v1094_v23 = vmul.f32 %v2209_v11, %v1089_v22 }
 0x1e2   : > { %v1099_v24 = vadd.f32 %v2210_v14, %v1094_v23 }
 0x1e4   : > { %1101 = vst.msk [vmem:[#allocation2 + $0x8] sm:$0x3] %vm1041_vm5, %v1099_v24 }
 0x1e5 PF: > { %vm1110_vm13 = vcmask 254976   ;;  %v2637_v27 = vld [vmem:[#allocation2] sm:$0xff]  ;;  %vm1106_vm14 = vcmask 261120   ;;  %v2318_v29 = vmov 32.0   ;;  %v1172_v46 = vld [vmem:[%s2477_s5 + $0x18] sm:$0xff]  ;;  %v1171_v48 = vld [vmem:[%s2477_s5 + $0x10] sm:$0xff]  ;;  %s2934_s15 = scalar_lea.vmem %s2879_s10, %s2459_s24  ;;  %s2941_s0 = scalar_lea.vmem %s2889_s20, %s2459_s24 }
 0x1e6   : > { %v1107_v28 = vsel %vm1106_vm14, %v2637_v27, 0.0  ;;  %2227 = vrcp.f32 %v2318_v29  ;;  %v1209_v47 = vld [vmem:[%s2482_s30 + $0x18] sm:$0xff]  ;;  %2177 = vmatpush.msra.mxu2 %v1172_v46  ;;  %v1208_v49 = vld [vmem:[%s2482_s30 + $0x10] sm:$0xff]  ;;  %1195 = vmatpush.msra.mxu0 %v1172_v46  ;;  %v1170_v50 = vld [vmem:[%s2477_s5 + $0x8] sm:$0xff]  ;;  %s2932_s3 = sld [smem:[#allocation15_spill]]  ;;  %vm1270_vm6 = vcmask 64512  }
 0x1e7   : > { %2181 = vmatpush.msra.mxu3 %v1209_v47  ;;  %1226 = vmatpush.msra.mxu1 %v1209_v47  ;;  %v1207_v51 = vld [vmem:[%s2482_s30 + $0x8] sm:$0xff]  ;;  %v1169_v52 = vld [vmem:[%s2477_s5] sm:$0xff]  ;;  %v1240_v54 = vld [vmem:[%s2491_s8 + $0x18] sm:$0xff]  ;;  %s2930_s5 = sld [smem:[#allocation14_spill]]  ;;  %vm1336_vm7 = vcmask 1041408   ;;  %vm1306_vm8 = vcmask 80896  }
 0x1e8   : > { %2178 = vmatpush.msra.mxu2 %v1171_v48  ;;  %1196 = vmatpush.msra.mxu0 %v1171_v48  ;;  %v1206_v53 = vld [vmem:[%s2482_s30] sm:$0xff]  ;;  %v1239_v55 = vld [vmem:[%s2491_s8 + $0x10] sm:$0xff]  ;;  %v1238_v56 = vld [vmem:[%s2491_s8 + $0x8] sm:$0xff]  ;;  %s2935_s1 = sld [smem:[#allocation18_spill]]  ;;  %s2319_s30 = smov 120   ;;  %vm1310_vm9 = vcmask 74752  }
 0x1e9   : > { %2182 = vmatpush.msra.mxu3 %v1208_v49  ;;  %1227 = vmatpush.msra.mxu1 %v1208_v49  ;;  %v1237_v59 = vld [vmem:[%s2491_s8] sm:$0xff]  ;;  %s2938_s27 = sld [smem:[#allocation13_spill]]  ;;  %s2322_s26 = smov 8   ;;  %vm1681_vm10 = vcmask 130048   ;;  %vm1684_vm11 = vcmask 195584  }
 0x1ea   : > { %2179 = vmatpush.msra.mxu2 %v1170_v50  ;;  %1197 = vmatpush.msra.mxu0 %v1170_v50  ;;  %v2219_v22 = vld [vmem:[%s2934_s15] ss:$0 sm:$0xff] }
 0x1eb   : > { %v2633_v25 = vld [vmem:[#allocation2 + $0x8] sm:$0x3]  ;;  %2183 = vmatpush.msra.mxu3 %v1207_v51  ;;  %1228 = vmatpush.msra.mxu1 %v1207_v51 }
 0x1ec   : > { %v1111_v26 = vsel %vm1110_vm13, %v2633_v25, 0.0  ;;  %v2228_v30 = vpop.eup %2227  ;;  %2180 = vmatpush.msra.mxu2 %v1169_v52  ;;  %1198 = vmatpush.msra.mxu0 %v1169_v52  ;;  %s2933_s25 = scalar_lea.vmem %s2932_s3, %s2459_s24  ;;  %s2937_s3 = scalar_lea.vmem %s2883_s14, %s2459_s24 }
 0x1ed   : > { %1112 = vadd.xlane.f32.xlu0 %v1111_v26  ;;  %v1115_v31 = vmul.f32 32.0, %v2228_v30  ;;  %vm1119_vm15 = vweird.f32 %v2228_v30  ;;  %2184 = vmatpush.msra.mxu3 %v1206_v53  ;;  %s2931_s6 = scalar_lea.vmem %s2930_s5, %s2459_s24  ;;  %v2218_v12 = vld [vmem:[%s2933_s25] ss:$0 sm:$0xff]  ;;  %s2320_s5 = smov 104  }
 0x1ee   : > { %1229 = vmatpush.msra.mxu1 %v1206_v53  ;;  %1257 = vmatpush.msrb.mxu2 %v1240_v54  ;;  %v2217_v8 = vld [vmem:[%s2931_s6] ss:$0 sm:$0xff]  ;;  %s2936_s8 = scalar_lea.vmem %s2935_s1, %s2459_s24  ;;  %s2321_s6 = smov 112  }
 0x1ef   : > { %v1116_v32 = vsub.f32 1.0, %v1115_v31  ;;  %v2220_v23 = vld [vmem:[%s2936_s8] ss:$0 sm:$0xff]  ;;  %s2323_s1 = smov 24   ;;  %s2324_s8 = smov 16  }
 0x1f0   : > { %1258 = vmatpush.msrb.mxu2 %v1239_v55  ;;  %v1268_v50 = vld [vmem:[%s2938_s27] sm:$0xff] }
 0x1f1   : > { %v1117_v33 = vmul.f32 %v2228_v30, %v1116_v32 }
 0x1f2   : > { %1259 = vmatpush.msrb.mxu2 %v1238_v56  ;;  %v1269_v56 = vld [vmem:[%s2938_s27 + $0x8] sm:$0x3] }
 0x1f3   : > { %v1118_v34 = vadd.f32 %v2228_v30, %v1117_v33 }
 0x1f4   : > { %1260 = vmatpush.msrb.mxu2 %v1237_v59 }
 0x1f5   : > { %1108 = vadd.xlane.f32.xlu0 %v1107_v28  ;;  %v2641_v35 = vsel %vm1119_vm15, %v2228_v30, %v1118_v34 }
 0x260   : > { %v1113_v36 = vpop.xlane.xlu0 %1112 }
 0x261   : > { %v1122_v37 = vmul.f32 %v2641_v35, %v1113_v36  ;;  %v2221_v36 = vld [vmem:[%s2937_s3] ss:$0 sm:$0xff]  ;;  %s2940_s3 = scalar_lea.vmem %s2887_s18, %s2459_s24 }
 0x263   : > { %v2645_v38 = vsub.f32 %v2633_v25, %v1122_v37 }
 0x265   : > { %v1126_v39 = vmul.f32 %v2645_v38, %v2645_v38 }
 0x267   : > { %v1130_v40 = vsel %vm1110_vm13, %v1126_v39, 0.0 }
 0x268   : > { %1131 = vadd.xlane.f32.xlu1 %v1130_v40  ;;  %v1109_v41 = vpop.xlane.xlu0 %1108 }
 0x269   : > { %v1121_v42 = vmul.f32 %v2641_v35, %v1109_v41 }
 0x26b   : > { %v2652_v43 = vsub.f32 %v2637_v27, %v1121_v42 }
 0x26d   : > { %v1125_v44 = vmul.f32 %v2652_v43, %v2652_v43 }
 0x26f   : > { %v1127_v45 = vsel %vm1106_vm14, %v1125_v44, 0.0 }
 0x270   : > { %1128 = vadd.xlane.f32.xlu1 %v1127_v45 }
 0x2db   : > { %v1132_v57 = vpop.xlane.xlu1 %1131 }
 0x2dc   : > { %v1134_v58 = vmul.f32 %v1132_v57, %v2641_v35 }
 0x2de   : > { %v1136_v60 = vadd.f32 1e-05, %v1134_v58 }
 0x2e0   : > { %2229 = vrsqrt.f32 %v1136_v60  ;;  %vm1153_vm1 = vweird.f32 %v1136_v60 }
 0x2e3   : > { %v1129_v61 = vpop.xlane.xlu1 %1128 }
 0x2e4   : > { %v1133_v62 = vmul.f32 %v1129_v61, %v2641_v35 }
 0x2e6   : > { %v2230_v63 = vpop.eup %2229  ;;  %v1135_v0 = vadd.f32 1e-05, %v1133_v62 }
 0x2e7   : > { %v1148_v1 = vmul.f32 %v2230_v63, %v1136_v60  ;;  %vm1154_vm0 = vweird.f32 %v2230_v63 }
 0x2e8   : > { %2231 = vrsqrt.f32 %v1135_v0  ;;  %vm1155_vm2 = vmor %vm1153_vm1, %vm1154_vm0  ;;  %vm1143_vm4 = vweird.f32 %v1135_v0 }
 0x2e9   : > { %v1149_v2 = vmul.f32 %v2230_v63, %v1148_v1 }
 0x2eb   : > { %v1150_v3 = vmul.f32 0.5, %v1149_v2 }
 0x2ed   : > { %v1151_v4 = vsub.f32 1.5, %v1150_v3 }
 0x2ee   : > { %v2232_v5 = vpop.eup %2231 }
 0x2ef   : > { %v1152_v6 = vmul.f32 %v2230_v63, %v1151_v4  ;;  %v1138_v7 = vmul.f32 %v2232_v5, %v1135_v0  ;;  %vm1144_vm3 = vweird.f32 %v2232_v5 }
 0x2f0   : > { %vm1145_vm5 = vmor %vm1143_vm4, %vm1144_vm3 }
 0x2f1   : > { %v1156_v9 = vsel %vm1155_vm2, %v2230_v63, %v1152_v6  ;;  %v1139_v10 = vmul.f32 %v2232_v5, %v1138_v7 }
 0x2f2   : > { %v1158_v11 = vmul.f32 %v1156_v9, %v2645_v38 }
 0x2f3   : > { %v1140_v13 = vmul.f32 0.5, %v1139_v10 }
 0x2f4   : > { %v1163_v14 = vmul.f32 %v2217_v8, %v1158_v11 }
 0x2f5   : > { %v1141_v15 = vsub.f32 1.5, %v1140_v13 }
 0x2f6   : > { %v1168_v16 = vadd.f32 %v2218_v12, %v1163_v14 }
 0x2f7   : > { %v1142_v17 = vmul.f32 %v2232_v5, %v1141_v15 }
 0x2f8   : > { %2126 = vmatmul.msk.f32.vlgmr.msra.gmra.mxu2 %vm1106_vm14, %v1168_v16  ;;  %2128 = vmatmul.msk.f32.vlgmr.msra.gmra.mxu3 %vm1106_vm14, %v1168_v16 }
 0x2f9   : > { %v1146_v18 = vsel %vm1145_vm5, %v2232_v5, %v1142_v17 }
 0x2fa   : > { %v1157_v19 = vmul.f32 %v1146_v18, %v2652_v43 }
 0x2fc   : > { %v1162_v20 = vmul.f32 %v2217_v8, %v1157_v19 }
 0x2fe   : > { %v1167_v21 = vadd.f32 %v2218_v12, %v1162_v20 }
 0x300   : > { %2125 = vmatmul.msk.f32.vlgmr.msra.gmra.mxu0 %vm1106_vm14, %v1167_v21  ;;  %2127 = vmatmul.msk.f32.vlgmr.msra.gmra.mxu1 %vm1106_vm14, %v1167_v21 }
 0x301   : > { %2129 = vmatmul.msk.f32.vlgmr.msrb.gmra.mxu2 %vm1106_vm14, %v1167_v21 }
 0x309   : > { %2130 = vmatmul.msk.f32.gmra.mxu2 %vm1106_vm14, %v1168_v16 }
 0x37b   : > { %v1203_v24 = vpop.f32.mrf.mxu2  ;;  %v1234_v26 = vpop.f32.mrf.mxu3 }
 0x37c   : > { %v1204_v28 = vadd.f32 %v2219_v22, %v1203_v24  ;;  %v1235_v29 = vadd.f32 %v2220_v23, %v1234_v26 }
 0x37d   : > { %v1200_v30 = vpop.f32.mrf.mxu0  ;;  %v1231_v31 = vpop.f32.mrf.mxu1 }
 0x37e   : > { %v1201_v32 = vadd.f32 %v2219_v22, %v1200_v30  ;;  %v1232_v33 = vadd.f32 %v2220_v23, %v1231_v31  ;;  %2131 = vmatpush.xpose.msk.msrb.mxu3 %vm1270_vm6, %v1235_v29  ;;  %1365 = vrot.lane.b32.xlu1 %v1204_v28, %s2319_s30 }
 0x380   : > { %1367 = vrot.lane.b32.xlu2 %v1232_v33, %s2319_s30  ;;  %1363 = vrot.lane.b32.xlu0 %v1201_v32, %s2319_s30 }
 0x382   : > { %2132 = vmatpush.xpose.msk.msrb.mxu3 %vm1270_vm6, %v1232_v33 }
 0x384   : > { %v1262_v34 = vpop.f32.mrf.mxu2 }
 0x385   : > { %2133 = vmatmul.msk.f32.vlgmr.msrb.gmra.mxu3 %vm1270_vm6, %v1201_v32  ;;  %v2716_v39 = vadd.f32 %v2221_v36, %v1262_v34 }
 0x386   : > { %1558 = vrot.lane.b32.xlu1 %v1201_v32, %s2320_s5 }
 0x388   : > { %1465 = vrot.lane.b32.xlu2 %v1232_v33, %s2321_s6  ;;  %1562 = vrot.lane.b32.xlu0 %v1232_v33, %s2320_s5 }
 0x38c   : > { %v1265_v37 = vpop.f32.mrf.mxu2 }
 0x38d   : > { %v2713_v38 = vadd.f32 %v2221_v36, %v1265_v37  ;;  %2134 = vmatmul.msk.f32.gmra.mxu3 %vm1270_vm6, %v1204_v28 }
 0x38f   : > { %2135 = vmatpush.msk.msrb.mxu0 %vm1336_vm7, %v2713_v38 }
 0x390   : > { %1369 = vrot.lane.b32.xlu2 %v1235_v29, %s2319_s30  ;;  %1463 = vrot.lane.b32.xlu0 %v1204_v28, %s2321_s6 }
 0x391   : > { %1355 = vmatpush.msrb.mxu0 %v2716_v39 }
 0x398   : > { %1467 = vrot.lane.b32.xlu2 %v1235_v29, %s2321_s6 }
 0x3a0   : > { %1564 = vrot.lane.b32.xlu2 %v1235_v29, %s2320_s5 }
 0x3a8   : > { %1461 = vrot.lane.b32.xlu2 %v1201_v32, %s2321_s6 }
 0x3b0   : > { %1560 = vrot.lane.b32.xlu2 %v1204_v28, %s2320_s5 }
 0x3da   : > { %v1368_v40 = vpop.permute.xlu2 %1367 }
 0x3e2   : > { %v1466_v41 = vpop.permute.xlu2 %1465 }
 0x3ea   : > { %v1370_v42 = vpop.permute.xlu2 %1369 }
 0x3eb   : > { %2138 = vmatpush.xpose.msk.msrb.mxu1 %vm1270_vm6, %v1370_v42 }
 0x3ef   : > { %2139 = vmatpush.xpose.msk.msrb.mxu1 %vm1270_vm6, %v1368_v40 }
 0x3f0   : > { %v1366_v45 = vpop.permute.xlu1 %1365 }
 0x3f2   : > { %v1468_v43 = vpop.permute.xlu2 %1467  ;;  %v1364_v44 = vpop.permute.xlu0 %1363 }
 0x3f3   : > { %2140 = vmatmul.msk.f32.vlgmr.msrb.gmra.mxu1 %vm1270_vm6, %v1364_v44  ;;  %2145 = vmatpush.xpose.msk.msra.mxu3 %vm1270_vm6, %v1468_v43 }
 0x3f7   : > { %2146 = vmatpush.xpose.msk.msra.mxu3 %vm1270_vm6, %v1466_v41 }
 0x3f8   : > { %v1559_v48 = vpop.permute.xlu1 %1558 }
 0x3fa   : > { %v1565_v46 = vpop.permute.xlu2 %1564  ;;  %v1563_v47 = vpop.permute.xlu0 %1562 }
 0x3fb   : > { %2141 = vmatmul.msk.f32.gmra.mxu1 %vm1270_vm6, %v1366_v45 }
 0x3fc   : > { %2152 = vmatpush.xpose.msk.msra.mxu1 %vm1270_vm6, %v1565_v46 }
 0x400   : > { %2153 = vmatpush.xpose.msk.msra.mxu1 %vm1270_vm6, %v1563_v47 }
 0x402   : > { %v1462_v49 = vpop.permute.xlu2 %1461  ;;  %v1464_v53 = vpop.permute.xlu0 %1463 }
 0x403   : > { %2147 = vmatmul.msk.f32.vlgmr.msra.gmra.mxu3 %vm1270_vm6, %v1462_v49  ;;  %2154 = vmatmul.msk.f32.vlgmr.msra.gmra.mxu1 %vm1270_vm6, %v1559_v48 }
 0x408   : > { %v1300_v51 = vpop.f32.mrf.mxu3 }
 0x409   : > { %v1301_v52 = vadd.f32 %v1300_v51, %v1268_v50 }
 0x40a   : > { %v1561_v54 = vpop.permute.xlu2 %1560 }
 0x40b   : > { %2148 = vmatmul.msk.f32.gmra.mxu3 %vm1270_vm6, %v1464_v53  ;;  %2155 = vmatmul.msk.f32.gmra.mxu1 %vm1270_vm6, %v1561_v54  ;;  %v1307_v55 = vsel %vm1306_vm8, %v1301_v52, -inf }
 0x40c   : > { %1308 = vmax.xlane.f32.xlu0 %v1307_v55 }
 0x410   : > { %v1303_v57 = vpop.f32.mrf.mxu3 }
 0x411   : > { %v1304_v58 = vadd.f32 %v1303_v57, %v1269_v56 }
 0x413   : > { %v1311_v59 = vsel %vm1310_vm9, %v1304_v58, -inf }
 0x414   : > { %1312 = vmax.xlane.f32.xlu1 %v1311_v59 }
 0x470   : > { %v1396_v60 = vpop.f32.mrf.mxu1 }
 0x471   : > { %v1397_v61 = vadd.f32 %v1396_v60, %v1268_v50 }
 0x473   : > { %v1402_v62 = vsel %vm1306_vm8, %v1397_v61, -inf }
 0x474   : > { %1403 = vmax.xlane.f32.xlu1 %v1402_v62 }
 0x478   : > { %v1399_v63 = vpop.f32.mrf.mxu1 }
 0x479   : > { %v1400_v10 = vadd.f32 %v1399_v63, %v1269_v56 }
 0x47b   : > { %v1405_v15 = vsel %vm1310_vm9, %v1400_v10, -inf }
 0x47f   : > { %v1309_v0 = vpop.xlane.xlu0 %1308 }
 0x480   : > { %v1314_v1 = vsub.f32 %v1301_v52, %v1309_v0  ;;  %v1591_v3 = vpop.f32.mrf.mxu1 }
 0x481   : > { %v1592_v17 = vadd.f32 %v1591_v3, %v1268_v50 }
 0x482   : > { %v1316_v2 = vmul.f32 1.442695, %v1314_v1 }
 0x483   : > { %v1597_v18 = vsel %vm1306_vm8, %v1592_v17, -inf }
 0x484   : > { %2233 = vpow2.f32 %v1316_v2 }
 0x486   : > { %v1494_v4 = vpop.f32.mrf.mxu3 }
 0x487   : > { %v1495_v5 = vadd.f32 %v1494_v4, %v1268_v50  ;;  %v1313_v19 = vpop.xlane.xlu1 %1312 }
 0x488   : > { %v1594_v9 = vpop.f32.mrf.mxu1  ;;  %v1315_v20 = vsub.f32 %v1304_v58, %v1313_v19 }
 0x489   : > { %v1500_v6 = vsel %vm1306_vm8, %v1495_v5, -inf  ;;  %v1595_v12 = vadd.f32 %v1594_v9, %v1269_v56 }
 0x48a   : > { %v2234_v7 = vpop.eup %2233  ;;  %1501 = vmax.xlane.f32.xlu2 %v1500_v6  ;;  %v1318_v21 = vmul.f32 1.442695, %v1315_v20 }
 0x48b   : > { %v1320_v8 = vsel %vm1306_vm8, %v2234_v7, 0.0  ;;  %v1600_v16 = vsel %vm1310_vm9, %v1595_v12, -inf }
 0x48c   : > { %1321 = vadd.xlane.f32.xlu1 %v1320_v8  ;;  %2235 = vpow2.f32 %v1318_v21 }
 0x48e   : > { %v1497_v11 = vpop.f32.mrf.mxu3 }
 0x48f   : > { %v1498_v13 = vadd.f32 %v1497_v11, %v1269_v56 }
 0x491   : > { %v1503_v14 = vsel %vm1310_vm9, %v1498_v13, -inf }
 0x492   : > { %1504 = vmax.xlane.f32.xlu0 %v1503_v14  ;;  %1406 = vmax.xlane.f32.xlu2 %v1405_v15  ;;  %v2236_v22 = vpop.eup %2235 }
 0x493   : > { %v1323_v23 = vsel %vm1310_vm9, %v2236_v22, 0.0 }
 0x494   : > { %1601 = vmax.xlane.f32.xlu1 %v1600_v16 }
 0x49a   : > { %1598 = vmax.xlane.f32.xlu0 %v1597_v18 }
 0x4aa   : > { %1621 = vrot.lane.b32.xlu2 %v2713_v38, %s2320_s5 }
 0x4ad   : > { %1425 = vrot.lane.b32.xlu1 %v2716_v39, %s2319_s30 }
 0x4ae   : > { %1427 = vrot.lane.b32.xlu0 %v2713_v38, %s2319_s30 }
 0x4d3   : > { %1324 = vadd.xlane.f32.xlu2 %v1323_v23 }
 0x4e7   : > { %v1404_v24 = vpop.xlane.xlu1 %1403 }
 0x4e8   : > { %v1408_v26 = vsub.f32 %v1397_v61, %v1404_v24 }
 0x4ea   : > { %v1410_v28 = vmul.f32 1.442695, %v1408_v26 }
 0x4ec   : > { %2237 = vpow2.f32 %v1410_v28 }
 0x4f2   : > { %v2238_v29 = vpop.eup %2237 }
 0x4f3   : > { %v1414_v30 = vsel %vm1306_vm8, %v2238_v29, 0.0 }
 0x4f4   : > { %1415 = vadd.xlane.f32.xlu2 %v1414_v30 }
 0x4fd   : > { %v1502_v31 = vpop.xlane.xlu2 %1501 }
 0x4fe   : > { %v1506_v32 = vsub.f32 %v1495_v5, %v1502_v31 }
 0x4ff   : > { %v1322_v33 = vpop.xlane.xlu1 %1321 }
 0x500   : > { %v1508_v34 = vmul.f32 1.442695, %v1506_v32  ;;  %2239 = vrcp.f32 %v1322_v33  ;;  %v1690_v33 = vld [vmem:[%s2500_s9 + $0x18] sm:$0xff] }
 0x501   : > { %1713 = vmatpush.msrb.mxu3 %v1690_v33 }
 0x502   : > { %2241 = vpow2.f32 %v1508_v34  ;;  %v1689_v34 = vld [vmem:[%s2500_s9 + $0x10] sm:$0xff] }
 0x503   : > { %1714 = vmatpush.msrb.mxu3 %v1689_v34 }
 0x505   : > { %v1505_v36 = vpop.xlane.xlu0 %1504  ;;  %v1407_v37 = vpop.xlane.xlu2 %1406 }
 0x506   : > { %v2240_v40 = vpop.eup %2239  ;;  %v1507_v41 = vsub.f32 %v1498_v13, %v1505_v36  ;;  %v1409_v42 = vsub.f32 %v1400_v10, %v1407_v37  ;;  %v1688_v36 = vld [vmem:[%s2500_s9 + $0x8] sm:$0xff]  ;;  %v1687_v37 = vld [vmem:[%s2500_s9] sm:$0xff] }
 0x507   : > { %v1602_v43 = vpop.xlane.xlu1 %1601  ;;  %v1328_v44 = vmul.f32 %v2240_v40, %v2234_v7  ;;  %1715 = vmatpush.msrb.mxu3 %v1688_v36 }
 0x508   : > { %v2762_v45 = vpop.eup %2241  ;;  %v1510_v46 = vmul.f32 1.442695, %v1507_v41  ;;  %v1412_v47 = vmul.f32 1.442695, %v1409_v42  ;;  %v1604_v48 = vsub.f32 %v1595_v12, %v1602_v43 }
 0x509   : > { %2136 = vmatmul.msk.f32.vlgmr.msrb.gmra.mxu0 %vm1306_vm8, %v1328_v44  ;;  %v1512_v49 = vsel %vm1306_vm8, %v2762_v45, 0.0  ;;  %1716 = vmatpush.msrb.mxu3 %v1687_v37  ;;  %v1868_v37 = vld [vmem:[%s2527_s11 + $0x38] sm:$0xff] }
 0x50a   : > { %2243 = vpow2.f32 %v1510_v46  ;;  %v1607_v50 = vmul.f32 1.442695, %v1604_v48  ;;  %1513 = vadd.xlane.f32.xlu0 %v1512_v49  ;;  %1888 = vmatpush.msrb.mxu1 %v1868_v37 }
 0x50b   : > { %2245 = vpow2.f32 %v1412_v47 }
 0x50c   : > { %2247 = vpow2.f32 %v1607_v50 }
 0x50d   : > { %v1599_v51 = vpop.xlane.xlu0 %1598  ;;  %v1622_v0 = vpop.permute.xlu2 %1621 }
 0x50e   : > { %v1603_v52 = vsub.f32 %v1592_v17, %v1599_v51 }
 0x510   : > { %v2244_v53 = vpop.eup %2243  ;;  %v1605_v54 = vmul.f32 1.442695, %v1603_v52 }
 0x511   : > { %v2246_v55 = vpop.eup %2245  ;;  %v1515_v56 = vsel %vm1310_vm9, %v2244_v53, 0.0 }
 0x512   : > { %v2248_v57 = vpop.eup %2247  ;;  %2249 = vpow2.f32 %v1605_v54  ;;  %1516 = vadd.xlane.f32.xlu0 %v1515_v56  ;;  %v1417_v58 = vsel %vm1310_vm9, %v2246_v55, 0.0 }
 0x513   : > { %1418 = vadd.xlane.f32.xlu2 %v1417_v58  ;;  %v1612_v59 = vsel %vm1310_vm9, %v2248_v57, 0.0 }
 0x514   : > { %1613 = vadd.xlane.f32.xlu1 %v1612_v59 }
 0x518   : > { %v2250_v60 = vpop.eup %2249 }
 0x519   : > { %v1609_v61 = vsel %vm1306_vm8, %v2250_v60, 0.0 }
 0x51b   : > { %1610 = vadd.xlane.f32.xlu2 %v1609_v61 }
 0x51f   : > { %v1426_v63 = vpop.permute.xlu1 %1425 }
 0x520   : > { %v1428_v62 = vpop.permute.xlu0 %1427 }
 0x521   : > { %2142 = vmatpush.msk.msra.mxu2 %vm1336_vm7, %v1428_v62 }
 0x523   : > { %1453 = vmatpush.msra.mxu2 %v1426_v63 }
 0x525   : > { %2156 = vmatpush.msk.msrb.mxu2 %vm1336_vm7, %v1622_v0 }
 0x533   : > { %1619 = vrot.lane.b32.xlu2 %v2716_v39, %s2320_s5  ;;  %s2939_s5 = scalar_lea.vmem %s2885_s16, %s2459_s24 }
 0x534   : > { %v2222_v52 = vld [vmem:[%s2939_s5] ss:$0 sm:$0xff] }
 0x53b   : > { %1524 = vrot.lane.b32.xlu2 %v2713_v38, %s2321_s6 }
 0x543   : > { %1522 = vrot.lane.b32.xlu2 %v2716_v39, %s2321_s6 }
 0x546   : > { %v1325_v1 = vpop.xlane.xlu2 %1324 }
 0x547   : > { %2251 = vrcp.f32 %v1325_v1 }
 0x54d   : > { %v2252_v2 = vpop.eup %2251 }
 0x54e   : > { %v1329_v3 = vmul.f32 %v2252_v2, %v2236_v22 }
 0x550   : > { %2137 = vmatmul.msk.f32.gmra.mxu0 %vm1306_vm8, %v1329_v3 }
 0x567   : > { %v1416_v4 = vpop.xlane.xlu2 %1415 }
 0x568   : > { %2253 = vrcp.f32 %v1416_v4 }
 0x56e   : > { %v2254_v5 = vpop.eup %2253 }
 0x56f   : > { %v1422_v6 = vmul.f32 %v2254_v5, %v2238_v29  ;;  %v1785_v5 = vld [vmem:[%s2517_s29 + $0x18] sm:$0xff] }
 0x571   : > { %2143 = vmatmul.msk.f32.vlgmr.msra.gmra.mxu2 %vm1306_vm8, %v1422_v6  ;;  %v1784_v6 = vld [vmem:[%s2517_s29 + $0x10] sm:$0xff] }
 0x57d   : > { %v1514_v13 = vpop.xlane.xlu0 %1513 }
 0x585   : > { %v1517_v17 = vpop.xlane.xlu0 %1516 }
 0x586   : > { %v1419_v7 = vpop.xlane.xlu2 %1418  ;;  %v1357_v26 = vpop.f32.mrf.mxu0 }
 0x587   : > { %2255 = vrcp.f32 %v1419_v7  ;;  %v1614_v39 = vpop.xlane.xlu1 %1613  ;;  %v1783_v7 = vld [vmem:[%s2517_s29 + $0x8] sm:$0xff] }
 0x58d   : > { %v2256_v8 = vpop.eup %2255 }
 0x58e   : > { %v1611_v9 = vpop.xlane.xlu2 %1610  ;;  %v1423_v38 = vmul.f32 %v2256_v8, %v2246_v55  ;;  %v1782_v8 = vld [vmem:[%s2517_s29] sm:$0xff]  ;;  %s2944_s29 = sld [smem:[#allocation21_spill]] }
 0x58f   : > { %2257 = vrcp.f32 %v1611_v9 }
 0x590   : > { %2144 = vmatmul.msk.f32.gmra.mxu2 %vm1306_vm8, %v1423_v38  ;;  %2259 = vrcp.f32 %v1614_v39 }
 0x591   : > { %2261 = vrcp.f32 %v1514_v13 }
 0x592   : > { %2263 = vrcp.f32 %v1517_v17 }
 0x594   : > { %s1914_s6 = sshll.u32 %s2944_s29, 4  ;;  %s1915_s6 = int_to_ptr.hbm [resolvable:$true] %s1914_s6 }
 0x595   : > { %v2258_v10 = vpop.eup %2257 }
 0x596   : > { %v1617_v11 = vmul.f32 %v2258_v10, %v2250_v60  ;;  %v1620_v12 = vpop.permute.xlu2 %1619  ;;  %v2260_v14 = vpop.eup %2259 }
 0x597   : > { %1647 = vmatpush.msrb.mxu2 %v1620_v12  ;;  %v1618_v16 = vmul.f32 %v2260_v14, %v2248_v57  ;;  %v2262_v18 = vpop.eup %2261 }
 0x598   : > { %2157 = vmatmul.msk.f32.vlgmr.msrb.gmra.mxu2 %vm1306_vm8, %v1617_v11  ;;  %v1520_v19 = vmul.f32 %v2262_v18, %v2762_v45  ;;  %v2264_v21 = vpop.eup %2263 }
 0x599   : > { %v1521_v22 = vmul.f32 %v2264_v21, %v2244_v53  ;;  %v2223_v21 = vld [vmem:[%s917_s2] ss:$0 sm:$0xff] }
 0x59e   : > { %v1525_v15 = vpop.permute.xlu2 %1524 }
 0x59f   : > { %2149 = vmatpush.msk.msra.mxu0 %vm1336_vm7, %v1525_v15 }
 0x5a0   : > { %2158 = vmatmul.msk.f32.gmra.mxu2 %vm1306_vm8, %v1618_v16 }
 0x5a6   : > { %v1523_v20 = vpop.permute.xlu2 %1522 }
 0x5a7   : > { %1550 = vmatpush.msra.mxu0 %v1523_v20 }
 0x5a8   : > { %2150 = vmatmul.msk.f32.vlgmr.msra.gmra.mxu0 %vm1306_vm8, %v1520_v19 }
 0x5a9   : > { %1808 = vmatpush.msrb.mxu0 %v1785_v5 }
 0x5ab   : > { %1809 = vmatpush.msrb.mxu0 %v1784_v6 }
 0x5ad   : > { %1810 = vmatpush.msrb.mxu0 %v1783_v7 }
 0x5af   : > { %1811 = vmatpush.msrb.mxu0 %v1782_v8 }
 0x5b0   : > { %2151 = vmatmul.msk.f32.gmra.mxu0 %vm1306_vm8, %v1521_v22  ;;  %vm1873_vm8 = vcmask 523264  }
 0x5cd   : > { %v1360_v29 = vpop.f32.mrf.mxu0 }
 0x5f4   : > { %v1455_v23 = vpop.f32.mrf.mxu2 }
 0x5f5   : > { %1657 = vrot.lane.b32.xlu0 %v1455_v23, %s2322_s26 }
 0x613   : > { %v1458_v24 = vpop.f32.mrf.mxu2 }
 0x614   : > { %1659 = vrot.lane.b32.xlu2 %v1458_v24, %s2322_s26  ;;  %v2224_v24 = vld [vmem:[%s2940_s3] ss:$0 sm:$0xff] }
 0x61b   : > { %v1649_v28 = vpop.f32.mrf.mxu2 }
 0x61c   : > { %1673 = vrot.lane.b32.xlu2 %v1649_v28, %s2323_s1 }
 0x623   : > { %v1652_v30 = vpop.f32.mrf.mxu2 }
 0x624   : > { %1675 = vrot.lane.b32.xlu2 %v1652_v30, %s2323_s1  ;;  %s2943_s1 = scalar_lea.vmem %s2891_s22, %s2459_s24  ;;  %s2326_s24 = smov 128  }
 0x625   : > { %v1552_v31 = vpop.f32.mrf.mxu0 }
 0x626   : > { %1665 = vrot.lane.b32.xlu1 %v1552_v31, %s2324_s8 }
 0x62d   : > { %v1555_v32 = vpop.f32.mrf.mxu0 }
 0x62e   : > { %1667 = vrot.lane.b32.xlu0 %v1555_v32, %s2324_s8  ;;  %s2325_s8 = smov [#allocation2]  }
 0x62f   : > { %s1912_s9 = sshll.u32 %s2325_s8, 4  ;;  %s1913_s9 = int_to_ptr.vmem [resolvable:$true] %s1912_s9 }
 0x667   : > { %v1658_v41 = vpop.permute.xlu0 %1657 }
 0x668   : > { %v1679_v43 = vsel %vm1270_vm6, %v1357_v26, %v1658_v41  ;;  %v1866_v41 = vld [vmem:[%s2527_s11 + $0x28] sm:$0xff] }
 0x66e   : > { %v1660_v40 = vpop.permute.xlu2 %1659 }
 0x66f   : > { %v1680_v47 = vsel %vm1270_vm6, %v1360_v29, %v1660_v40  ;;  %v1867_v40 = vld [vmem:[%s2527_s11 + $0x30] sm:$0xff] }
 0x670   : > { %1889 = vmatpush.msrb.mxu1 %v1867_v40 }
 0x672   : > { %1890 = vmatpush.msrb.mxu1 %v1866_v41 }
 0x676   : > { %v1674_v42 = vpop.permute.xlu2 %1673 }
 0x67e   : > { %v1676_v49 = vpop.permute.xlu2 %1675 }
 0x698   : > { %v1666_v44 = vpop.permute.xlu1 %1665 }
 0x699   : > { %v1682_v45 = vsel %vm1681_vm10, %v1679_v43, %v1666_v44  ;;  %v1864_v43 = vld [vmem:[%s2527_s11 + $0x18] sm:$0xff]  ;;  %v2225_v44 = vld [vmem:[%s2941_s0] ss:$0 sm:$0xff] }
 0x69a   : > { %v1685_v46 = vsel %vm1684_vm11, %v1682_v45, %v1674_v42  ;;  %v1865_v42 = vld [vmem:[%s2527_s11 + $0x20] sm:$0xff]  ;;  %v1863_v45 = vld [vmem:[%s2527_s11 + $0x10] sm:$0xff] }
 0x69b   : > { %2159 = vmatmul.msk.f32.vlgmr.msrb.gmra.mxu3 %vm1106_vm14, %v1685_v46  ;;  %1891 = vmatpush.msrb.mxu1 %v1865_v42  ;;  %v1862_v46 = vld [vmem:[%s2527_s11 + $0x8] sm:$0xff] }
 0x69d   : > { %1892 = vmatpush.msrb.mxu1 %v1864_v43 }
 0x69f   : > { %1893 = vmatpush.msrb.mxu1 %v1863_v45 }
 0x6a0   : > { %v1668_v48 = vpop.permute.xlu0 %1667 }
 0x6a1   : > { %v1683_v50 = vsel %vm1681_vm10, %v1680_v47, %v1668_v48  ;;  %1894 = vmatpush.msrb.mxu1 %v1862_v46 }
 0x6a2   : > { %v1686_v51 = vsel %vm1684_vm11, %v1683_v50, %v1676_v49  ;;  %v1861_v49 = vld [vmem:[%s2527_s11] sm:$0xff]  ;;  %s2942_s11 = sld [smem:[#allocation6_spill]] }
 0x6a3   : > { %2160 = vmatmul.msk.f32.gmra.mxu3 %vm1106_vm14, %v1686_v51  ;;  %1895 = vmatpush.msrb.mxu1 %v1861_v49 }
 0x6a8   : > { %p2189_p5 = scmp.eq.s32.totalorder %s2942_s11, 1 }
 0x71e   : > { %v1718_v53 = vpop.f32.mrf.mxu3 }
 0x71f   : > { %v1719_v54 = vadd.f32 %v2222_v52, %v1718_v53 }
 0x721   : > { %v2804_v55 = vadd.f32 %v1719_v54, %v2637_v27 }
 0x723   : > { %v1728_v56 = vsel %vm1106_vm14, %v2804_v55, 0.0 }
 0x724   : > { %1729 = vadd.xlane.f32.xlu1 %v1728_v56 }
 0x726   : > { %v1721_v57 = vpop.f32.mrf.mxu3 }
 0x727   : > { %v1722_v58 = vadd.f32 %v2222_v52, %v1721_v57 }
 0x729   : > { %v2809_v59 = vadd.f32 %v1722_v58, %v2633_v25 }
 0x72b   : > { %v1731_v60 = vsel %vm1110_vm13, %v2809_v59, 0.0 }
 0x72c   : > { %1732 = vadd.xlane.f32.xlu0 %v1731_v60 }
 0x797   : > { %v1730_v61 = vpop.xlane.xlu1 %1729 }
 0x798   : > { %v1734_v27 = vmul.f32 %v1730_v61, %v2641_v35 }
 0x79a   : > { %v1736_v62 = vsub.f32 %v2804_v55, %v1734_v27 }
 0x79c   : > { %v1738_v63 = vmul.f32 %v1736_v62, %v1736_v62 }
 0x79e   : > { %v1740_v0 = vsel %vm1106_vm14, %v1738_v63, 0.0 }
 0x79f   : > { %v1733_v1 = vpop.xlane.xlu0 %1732  ;;  %1741 = vadd.xlane.f32.xlu2 %v1740_v0 }
 0x7a0   : > { %v1735_v25 = vmul.f32 %v1733_v1, %v2641_v35 }
 0x7a2   : > { %v1737_v2 = vsub.f32 %v2809_v59, %v1735_v25 }
 0x7a4   : > { %v1739_v3 = vmul.f32 %v1737_v2, %v1737_v2 }
 0x7a6   : > { %v1743_v4 = vsel %vm1110_vm13, %v1739_v3, 0.0 }
 0x7a7   : > { %1744 = vadd.xlane.f32.xlu1 %v1743_v4 }
 0x812   : > { %v1742_v9 = vpop.xlane.xlu2 %1741 }
 0x813   : > { %v1746_v38 = vmul.f32 %v1742_v9, %v2641_v35 }
 0x815   : > { %v1748_v39 = vadd.f32 1e-05, %v1746_v38 }
 0x817   : > { %2265 = vrsqrt.f32 %v1748_v39  ;;  %vm1756_vm15 = vweird.f32 %v1748_v39 }
 0x81a   : > { %v1745_v10 = vpop.xlane.xlu1 %1744 }
 0x81b   : > { %v1747_v11 = vmul.f32 %v1745_v10, %v2641_v35 }
 0x81d   : > { %v2266_v12 = vpop.eup %2265  ;;  %v1749_v13 = vadd.f32 1e-05, %v1747_v11 }
 0x81e   : > { %v1751_v14 = vmul.f32 %v2266_v12, %v1748_v39  ;;  %vm1757_vm12 = vweird.f32 %v2266_v12 }
 0x81f   : > { %2267 = vrsqrt.f32 %v1749_v13  ;;  %vm1758_vm0 = vmor %vm1756_vm15, %vm1757_vm12  ;;  %vm1766_vm2 = vweird.f32 %v1749_v13 }
 0x820   : > { %v1752_v15 = vmul.f32 %v2266_v12, %v1751_v14 }
 0x822   : > { %v1753_v16 = vmul.f32 0.5, %v1752_v15 }
 0x824   : > { %v1754_v17 = vsub.f32 1.5, %v1753_v16  ;;  %v2226_v16 = vld [vmem:[%s2943_s1] ss:$0 sm:$0xff] }
 0x825   : > { %v2268_v18 = vpop.eup %2267 }
 0x826   : > { %v1755_v19 = vmul.f32 %v2266_v12, %v1754_v17  ;;  %v1761_v20 = vmul.f32 %v2268_v18, %v1749_v13  ;;  %vm1767_vm1 = vweird.f32 %v2268_v18 }
 0x827   : > { %vm1768_vm3 = vmor %vm1766_vm2, %vm1767_vm1 }
 0x828   : > { %v1759_v35 = vsel %vm1758_vm0, %v2266_v12, %v1755_v19  ;;  %v1762_v22 = vmul.f32 %v2268_v18, %v1761_v20 }
 0x829   : > { %v1770_v23 = vmul.f32 %v1759_v35, %v1736_v62 }
 0x82a   : > { %v1763_v26 = vmul.f32 0.5, %v1762_v22 }
 0x82b   : > { %v1775_v28 = vmul.f32 %v2223_v21, %v1770_v23 }
 0x82c   : > { %v1764_v29 = vsub.f32 1.5, %v1763_v26 }
 0x82d   : > { %v1780_v30 = vadd.f32 %v2224_v24, %v1775_v28 }
 0x82e   : > { %v1765_v31 = vmul.f32 %v2268_v18, %v1764_v29 }
 0x82f   : > { %2161 = vmatmul.msk.f32.vlgmr.msrb.gmra.mxu0 %vm1106_vm14, %v1780_v30 }
 0x830   : > { %v1769_v32 = vsel %vm1768_vm3, %v2268_v18, %v1765_v31 }
 0x831   : > { %v1771_v33 = vmul.f32 %v1769_v32, %v1737_v2 }
 0x833   : > { %v1776_v34 = vmul.f32 %v2223_v21, %v1771_v33 }
 0x835   : > { %v1781_v36 = vadd.f32 %v2224_v24, %v1776_v34 }
 0x837   : > { %2162 = vmatmul.msk.f32.gmra.mxu0 %vm1106_vm14, %v1781_v36 }
 0x8ac   : > { %v1813_v47 = vpop.f32.mrf.mxu0 }
 0x8ad   : > { %v1814_v48 = vadd.f32 %v2225_v44, %v1813_v47 }
 0x8af   : > { %v2163_v50 = vmul.f32 -1.702, %v1814_v48 }
 0x8b1   : > { %v1823_v51 = vmul.f32 1.442695, %v2163_v50 }
 0x8b3   : > { %2269 = vpow2.f32 %v1823_v51 }
 0x8b4   : > { %v1816_v52 = vpop.f32.mrf.mxu0 }
 0x8b5   : > { %v1817_v53 = vadd.f32 %v2225_v44, %v1816_v52 }
 0x8b7   : > { %v2164_v54 = vmul.f32 -1.702, %v1817_v53 }
 0x8b9   : > { %v2270_v56 = vpop.eup %2269  ;;  %v1825_v57 = vmul.f32 1.442695, %v2164_v54 }
 0x8ba   : > { %v1827_v58 = vadd.f32 1.0, %v2270_v56 }
 0x8bb   : > { %2271 = vpow2.f32 %v1825_v57 }
 0x8bc   : > { %2273 = vrcp.f32 %v1827_v58  ;;  %v1840_v0 = vand.u32 2147483648, %v1827_v58  ;;  %v1838_v25 = vand.u32 2147483647, %v1827_v58  ;;  %vm1834_vm5 = vweird.f32 %v1827_v58 }
 0x8be   : > { %v1841_v4 = vor.u32 1.1754944e-38, %v1840_v0  ;;  %vm1839_vm7 = vcmp.eq.f32.partialorder %v1838_v25, 8.507059e+37 }
 0x8c1   : > { %v2272_v60 = vpop.eup %2271 }
 0x8c2   : > { %v2274_v61 = vpop.eup %2273  ;;  %v1828_v27 = vadd.f32 1.0, %v2272_v60 }
 0x8c3   : > { %v1830_v62 = vmul.f32 %v2274_v61, %v1827_v58  ;;  %vm1835_vm4 = vweird.f32 %v2274_v61 }
 0x8c4   : > { %2275 = vrcp.f32 %v1828_v27  ;;  %vm1836_vm6 = vmor %vm1834_vm5, %vm1835_vm4  ;;  %v1855_v38 = vand.u32 2147483648, %v1828_v27  ;;  %v1853_v10 = vand.u32 2147483647, %v1828_v27  ;;  %vm1849_vm10 = vweird.f32 %v1828_v27 }
 0x8c5   : > { %v1831_v63 = vsub.f32 1.0, %v1830_v62 }
 0x8c6   : > { %v1856_v12 = vor.u32 1.1754944e-38, %v1855_v38  ;;  %vm1854_vm12 = vcmp.eq.f32.partialorder %v1853_v10, 8.507059e+37 }
 0x8c7   : > { %v1832_v1 = vmul.f32 %v2274_v61, %v1831_v63 }
 0x8c9   : > { %v1833_v2 = vadd.f32 %v2274_v61, %v1832_v1 }
 0x8ca   : > { %v2276_v3 = vpop.eup %2275 }
 0x8cb   : > { %v1837_v5 = vsel %vm1836_vm6, %v2274_v61, %v1833_v2  ;;  %v1845_v6 = vmul.f32 %v2276_v3, %v1828_v27  ;;  %vm1850_vm9 = vweird.f32 %v2276_v3 }
 0x8cc   : > { %v1842_v7 = vsel %vm1839_vm7, %v1841_v4, %v1837_v5  ;;  %vm1851_vm11 = vmor %vm1849_vm10, %vm1850_vm9 }
 0x8cd   : > { %v1859_v8 = vmul.f32 %v1842_v7, %v1814_v48  ;;  %v1846_v9 = vsub.f32 1.0, %v1845_v6 }
 0x8cf   : > { %v1847_v39 = vmul.f32 %v2276_v3, %v1846_v9  ;;  %2165 = vmatmul.msk.f32.vlgmr.msrb.gmra.mxu1 %vm1873_vm8, %v1859_v8 }
 0x8d1   : > { %v1848_v11 = vadd.f32 %v2276_v3, %v1847_v39 }
 0x8d3   : > { %v1852_v13 = vsel %vm1851_vm11, %v2276_v3, %v1848_v11 }
 0x8d4   : > { %v1857_v14 = vsel %vm1854_vm12, %v1856_v12, %v1852_v13 }
 0x8d5   : > { %v1860_v15 = vmul.f32 %v1857_v14, %v1817_v53 }
 0x8d7   : > { %2166 = vmatmul.msk.f32.gmra.mxu1 %vm1873_vm8, %v1860_v15 }
 0x94c   : > { %v1897_v17 = vpop.f32.mrf.mxu1 }
 0x94d   : > { %v1898_v18 = vadd.f32 %v2226_v16, %v1897_v17 }
 0x94f   : > { %v1903_v19 = vadd.f32 %v1898_v18, %v2804_v55 }
 0x951   : > { %1905 = vst.msk [vmem:[#allocation2] sm:$0xff] %vm1106_vm14, %v1903_v19 }
 0x954   : > { %v1900_v20 = vpop.f32.mrf.mxu1 }
 0x955   : > { %v1901_v21 = vadd.f32 %v2226_v16, %v1900_v20 }
 0x957   : > { %v1904_v35 = vadd.f32 %v1901_v21, %v2809_v59 }
 0x959   : > { %1906 = vst.msk [vmem:[#allocation2 + $0x8] sm:$0x3] %vm1110_vm13, %v1904_v35 }
 0x95a   : > { %2186 = dma.vmem_to_hbm [thread:$0]  (%p2189_p5), %s1913_s9, 256, %s1915_s6, [#allocation3], %s2326_s24, %s2326_s24, %s2322_s26  }
 0x95b   : > { %2310 = dma.done.wait (%p2189_p5), [#allocation3], 256  }
 0x95c   : > { %2312 = vsyncadd (%p2189_p5), [#allocation3], 4294967040 }
 0x95d PF: > { %s2945_s12 = sld [smem:[#allocation5_spill]] }
 0x963   : > { %s34_s4 = sadd.s32 1, %s2945_s12  }
 0x964   : > { %p31_p6 = scmp.ge.s32.totalorder %s34_s4, 4  }
 0x966   :  { %33 = sbr.rel (!%p31_p6) target bundleno = 17 (0x11), region = 188 }
 0x96b   :  { %1931 = vsyncpa [#allocation3], 1 }
 0x96c   :  { %1933 = vsyncpa [#allocation3 + $0x1], 1 }

</bundles_post_ra>
